<compile_context>
chip_gen: v5e
topology: v5e:2x2
jax: 0.10.0
libtpu: 0.0.40
codegen_flags: <defaults>
</compile_context>

<pallas_src>
import functools

import jax
import jax.numpy as jnp
from jax import lax
from jax.experimental import pallas as pl
from jax.experimental.pallas import tpu as pltpu

_NEG = -1e30      # masks padded classifier / prototype columns out of softmax
_LANE = 128


# ----------------------------- Pallas kernel -----------------------------

def _pico_encoder_kernel(patches_ref, wconv_ref, bconv_ref, w1_ref, b1_ref,
                         wc_ref, bc_ref, wp_ref, bp_ref, proto_ref, cbias_ref,
                         cls_ref, clu_ref, q_ref, hid_ref, *, tile_b, hw,
                         inv_vmf):
    """Fused: conv(as matmul)+ReLU -> global-avg-pool (VPU mean) -> fc+ReLU ->
    {softmax classifier, L2-normalized projection, prototype softmax}."""
    f32 = jnp.float32

    # conv lowered to matmul (bf16 operands, f32 accumulate) + bias + ReLU
    act = jnp.dot(patches_ref[...], wconv_ref[...], preferred_element_type=f32)
    act = jnp.maximum(act + bconv_ref[...], 0.0)               # (tile_b*hw, CP)

    # fused global average pool: reshape + VPU mean over the spatial axis
    # (hw is a multiple of 8, so the leading-dim split stays tile-aligned)
    pooled = jnp.mean(act.reshape(tile_b, hw, act.shape[-1]), axis=1)

    # hidden fc (bf16 x bf16, f32 acc) + ReLU
    h = jnp.dot(pooled.astype(jnp.bfloat16), w1_ref[...],
                preferred_element_type=f32) + b1_ref[...]
    h = jnp.maximum(h, 0.0)
    hid_ref[...] = h.astype(hid_ref.dtype)                     # bf16 writeback

    # classifier head (f32) + exact softmax; padded columns carry a -1e30 bias
    logits = jnp.dot(h, wc_ref[...], preferred_element_type=f32) + bc_ref[...]
    logits = logits - jnp.max(logits, axis=1, keepdims=True)
    e = jnp.exp(logits)
    cls_ref[...] = e / jnp.sum(e, axis=1, keepdims=True)

    # projection head (f32) + L2 normalize (F.normalize, eps=1e-12)
    f = jnp.dot(h, wp_ref[...], preferred_element_type=f32) + bp_ref[...]
    ssq = jnp.sum(f * f, axis=1, keepdims=True)
    qv = f * lax.rsqrt(jnp.maximum(ssq, 1e-24))
    q_ref[...] = qv

    # prototype logits (f32) / vMF + exact softmax, padded columns masked
    plog = lax.dot_general(qv, proto_ref[...], (((1,), (1,)), ((), ())),
                           preferred_element_type=f32) * inv_vmf + cbias_ref[...]
    plog = plog - jnp.max(plog, axis=1, keepdims=True)
    pe = jnp.exp(plog)
    clu_ref[...] = pe / jnp.sum(pe, axis=1, keepdims=True)


# ----------------------------- Padding / operand prep -----------------------------

def _rup(n, m=_LANE):
    return ((n + m - 1) // m) * m


def _pad2d(x, rows, cols, fill=0.0):
    out = jnp.full((rows, cols), fill, jnp.float32)
    return out.at[:x.shape[0], :x.shape[1]].set(x.astype(jnp.float32))


def _pad_row(v, cols, fill=0.0):
    out = jnp.full((1, cols), fill, jnp.float32)
    return out.at[0, :v.shape[0]].set(v.astype(jnp.float32))


def _prep_encoder_operands(params, prototypes):
    cout, hid = params["w1"].shape
    nc = params["wc"].shape[1]
    ld = params["wp"].shape[1]
    CP, HP, NCP, LDP = _rup(cout), _rup(hid), _rup(nc), _rup(ld)
    w_flat = params["w_conv"].reshape(params["w_conv"].shape[0], -1).T  # (C*9, Cout)
    bf16 = jnp.bfloat16
    ops = dict(
        # big matmuls in bf16 (f32 accumulation in-kernel)
        w_conv=_pad2d(w_flat, w_flat.shape[0], CP).astype(bf16),
        b_conv=_pad_row(params["b_conv"], CP),
        w1=_pad2d(params["w1"], CP, HP).astype(bf16),
        b1=_pad_row(params["b1"], HP),
        # heads / prototypes stay f32 (correctness: they feed softmax/argmax/EMA)
        wc=_pad2d(params["wc"], HP, NCP),
        bc=_pad_row(params["bc"], NCP, _NEG),          # pads -> -1e30 (softmax mask)
        wp=_pad2d(params["wp"], HP, LDP),
        bp=_pad_row(params["bp"], LDP),
        protos=_pad2d(prototypes, NCP, LDP),
        cbias=_pad_row(jnp.zeros((nc,), jnp.float32), NCP, _NEG),
    )
    return ops, (CP, HP, NCP, LDP)


# ----------------------------- Tiling & buffering helpers -----------------------------

def _choose_tiling(b, hw, k, CP, HP, NCP, LDP):
    """VMEM-budget-driven batch tile (multiple of 8 sublanes) + padded batch."""
    def step_bytes(tb):
        rows = tb * hw
        return (2 * rows * k * 2                 # bf16 patches, double-buffered
                + rows * CP * (4 + 2)            # f32 conv act + bf16 copy (live)
                + 2 * tb * (2 * NCP + LDP) * 4   # f32 output tiles, 2 buffers
                + 2 * tb * HP * 2)               # bf16 hiddens tile, 2 buffers

    budget = 10 << 20          # ~10 MiB/step: safe under v7x's 32 MiB scoped VMEM
    # target 2048-8192 patch rows per step to amortize the ~0.35us/step overhead
    tile_b = max(8, ((8192 + hw - 1) // hw) // 8 * 8)
    while tile_b > 8 and step_bytes(tile_b) > budget:
        tile_b -= 8
    tile_b = min(tile_b, _rup(b, 8))
    # prefer >= 2 grid steps: pipeline overlap + both v7x TensorCores get work
    if _rup(b, tile_b) // tile_b < 2 and tile_b >= 16:
        tile_b = max(8, _rup((b + 1) // 2, 8))
    b_pad = _rup(b, tile_b)
    return tile_b, b_pad


_SINGLE_BUFFER_WEIGHTS = None


def _probe_single_buffering():
    """pl.Buffered(1) (single-buffered resident weights) is not supported by
    every jax/libtpu version; probe once with a tiny kernel and fall back to
    default double buffering if it is rejected."""
    global _SINGLE_BUFFER_WEIGHTS
    if _SINGLE_BUFFER_WEIGHTS is not None:
        return _SINGLE_BUFFER_WEIGHTS

    def _k(x_ref, w_ref, o_ref):
        o_ref[...] = x_ref[...] + w_ref[...]

    try:
        x = jnp.zeros((16, 128), jnp.float32)
        w = jnp.zeros((8, 128), jnp.float32)
        out = pl.pallas_call(
            _k,
            out_shape=jax.ShapeDtypeStruct((16, 128), jnp.float32),
            grid=(2,),
            in_specs=[pl.BlockSpec((8, 128), lambda i: (i, 0)),
                      pl.BlockSpec((8, 128), lambda i: (0, 0),
                                   pipeline_mode=pl.Buffered(1))],
            out_specs=pl.BlockSpec((8, 128), lambda i: (i, 0)),
        )(x, w)
        jax.block_until_ready(out)
        _SINGLE_BUFFER_WEIGHTS = True
    except Exception:  # any failure -> default (double) buffering
        _SINGLE_BUFFER_WEIGHTS = False
    return _SINGLE_BUFFER_WEIGHTS


# ----------------------------- Fused encoder pallas_call -----------------------------

def _fused_encoder_call(patches, ops, b_pad, tile_b, hw, CP, HP, NCP, LDP, vmf):
    k = patches.shape[1]
    nb = b_pad // tile_b
    rows = tile_b * hw

    row = lambda i: (i, 0)
    rep = lambda i: (0, 0)                 # weights stay resident in VMEM

    def _rep_spec(shape):
        # Constant-index operands never re-DMA; single-buffer when supported.
        if _probe_single_buffering():
            return pl.BlockSpec(shape, rep, pipeline_mode=pl.Buffered(1))
        return pl.BlockSpec(shape, rep)

    in_specs = [
        pl.BlockSpec((rows, k), row),        # im2col patches (per batch tile)
        _rep_spec((k, CP)),                  # conv weight (bf16)
        _rep_spec((1, CP)),                  # conv bias
        _rep_spec((CP, HP)),                 # fc1 weight (bf16)
        _rep_spec((1, HP)),                  # fc1 bias
        _rep_spec((HP, NCP)),                # classifier weight (f32)
        _rep_spec((1, NCP)),                 # classifier bias (pads = -1e30)
        _rep_spec((HP, LDP)),                # projection weight (f32)
        _rep_spec((1, LDP)),                 # projection bias
        _rep_spec((NCP, LDP)),               # prototypes (f32, unscaled)
        _rep_spec((1, NCP)),                 # cluster mask bias (pads = -1e30)
    ]
    out_specs = (
        pl.BlockSpec((tile_b, NCP), row),
        pl.BlockSpec((tile_b, NCP), row),
        pl.BlockSpec((tile_b, LDP), row),
        pl.BlockSpec((tile_b, HP), row),
    )
    out_shape = (
        jax.ShapeDtypeStruct((b_pad, NCP), jnp.float32),   # softmax(classifier)
        jax.ShapeDtypeStruct((b_pad, NCP), jnp.float32),   # cluster_out
        jax.ShapeDtypeStruct((b_pad, LDP), jnp.float32),   # q
        jax.ShapeDtypeStruct((b_pad, HP), jnp.bfloat16),   # hiddens (bf16 writeback)
    )

    rows_total = b_pad * hw
    flops = 2 * (rows_total * k * CP + b_pad * CP * HP
                 + b_pad * HP * (NCP + LDP) + b_pad * LDP * NCP) + rows_total * CP
    transcendentals = 2 * b_pad * NCP
    bytes_accessed = (rows_total * k * 2
                      + (k * CP + CP * HP) * 2
                      + (HP * NCP + HP * LDP + NCP * LDP) * 4
                      + (CP + HP + 2 * NCP + LDP + NCP) * 4
                      + b_pad * (2 * NCP + LDP) * 4 + b_pad * HP * 2)
    cost = pl.CostEstimate(flops=int(flops), transcendentals=int(transcendentals),
                           bytes_accessed=int(bytes_accessed))

    kern = functools.partial(_pico_encoder_kernel, tile_b=tile_b, hw=hw,
                             inv_vmf=float(1.0 / vmf))
    return pl.pallas_call(
        kern,
        out_shape=out_shape,
        grid=(nb,),
        in_specs=in_specs,
        out_specs=out_specs,
        compiler_params=pltpu.CompilerParams(
            dimension_semantics=("parallel",),
            vmem_limit_bytes=32 * 1024 * 1024),   # raises v5e's 16 MiB scoped default
        cost_estimate=cost,
    )(patches, ops["w_conv"], ops["b_conv"], ops["w1"], ops["b1"],
      ops["wc"], ops["bc"], ops["wp"], ops["bp"], ops["protos"], ops["cbias"])


# ----------------------------- Encoder (glue + kernel) -----------------------------

def im2col_3x3(x):
    # x: NCHW, 3x3 kernel, stride 1, pad 1  -> (B*H*W, C*9), col = c*9+kh*3+kw
    b, c, h, w = x.shape
    xp = jnp.pad(x, ((0, 0), (0, 0), (1, 1), (1, 1)))
    patches = [xp[:, :, kh:kh + h, kw:kw + w] for kh in range(3) for kw in range(3)]
    p = jnp.stack(patches, axis=2)          # (B, C, 9, H, W)
    p = p.reshape(b, c * 9, h, w)           # matches torch w_conv.reshape(Cout,-1)
    p = p.transpose(0, 2, 3, 1).reshape(b * h * w, c * 9)
    return p


def encoder_forward(params, img, prototypes, vmf):
    """Synthetic base_encoder with the PiCO cluster head fused in.
    Returns lane-dense padded slabs (b_pad rows, 128-wide feature dims):
    (softmax(classifier), softmax(q @ protos.T / vMF), q, hiddens[bf16])."""
    b, c, h, w = img.shape
    hw = h * w
    assert hw % 8 == 0, "spatial size must keep the pooled reshape tile-aligned"
    ops, (CP, HP, NCP, LDP) = _prep_encoder_operands(params, prototypes)
    k = c * 9
    tile_b, b_pad = _choose_tiling(b, hw, k, CP, HP, NCP, LDP)
    if b_pad != b:
        img = jnp.pad(img, ((0, b_pad - b), (0, 0), (0, 0), (0, 0)))
    # TODO(synk): build the 3x3 shifted views inside the kernel from the padded
    # image block (or lax.conv) to avoid materializing the 9x im2col patch
    # matrix in HBM; kept in JAX (bf16, fused under jit) for robust lowering.
    patches = im2col_3x3(img).astype(jnp.bfloat16)          # (b_pad*H*W, C*9)
    return _fused_encoder_call(patches, ops, b_pad, tile_b, hw,
                               CP, HP, NCP, LDP, vmf)


# ----------------------------- PiCO forward -----------------------------

def pico_forward(state, img_q, img_k=None, plabel=None, args=None,
                 eval_only=False, shuffle_key=None):
    params_q = state["params_q"]
    params_k = state["params_k"]
    buffers = state["buffers"]
    prototypes = buffers["prototypes"]

    b = img_q.shape[0]
    nc = params_q["wc"].shape[1]
    ld = params_q["wp"].shape[1]
    hid = params_q["w1"].shape[1]

    cls_p, clu_p, q_p, hid_p = encoder_forward(params_q, img_q, prototypes,
                                               args["vMF"])
    # logical-width slices happen exactly once, at the module boundary
    classfy_out = cls_p[:b, :nc]
    cluster_out = clu_p[:b, :nc]
    q = q_p[:b, :ld]

    if eval_only:
        return classfy_out, cluster_out, q, hid_p[:b, :hid]

    num_class = prototypes.shape[0]
    predicted_scores = classfy_out * (plabel + args["piror"] * (1.0 - plabel))
    pseudo_labels = jnp.argmax(predicted_scores, axis=1)

    # Vectorized, order-preserving per-sample prototype EMA (replaces the
    # sequential for-loop): for class c hit by samples i1<...<in (in batch
    # order), p_c <- m^n * p_c + (1-m) * sum_j m^(n-j) * q_{i_j}
    m = args["proto_m"]
    onehot = jax.nn.one_hot(pseudo_labels, num_class, dtype=jnp.float32)   # (B,C)
    counts = jnp.sum(onehot, axis=0)                                       # (C,)
    ranks = jnp.sum(jnp.cumsum(onehot, axis=0) * onehot, axis=1)           # (B,)
    n_own = onehot @ counts                                                # (B,)
    coef = (1.0 - m) * jnp.power(m, n_own - ranks)                         # (B,)
    protos_upd = (prototypes * jnp.power(m, counts)[:, None]
                  + onehot.T @ (coef[:, None] * q))
    new_prototypes = protos_upd / jnp.maximum(
        jnp.linalg.norm(protos_upd, axis=1, keepdims=True), 1e-12)

    # momentum update of the key encoder
    new_params_k = jax.tree_util.tree_map(
        lambda pk, pq: pk * args["moco_m"] + pq * (1.0 - args["moco_m"]),
        params_k, params_q)

    # batch shuffle / unshuffle (single-device stand-in for the DDP shuffle)
    bsz = img_k.shape[0]
    idx_shuffle = jax.random.permutation(shuffle_key, bsz)
    idx_unshuffle = jnp.argsort(idx_shuffle)
    _, _, qk_p, _ = encoder_forward(new_params_k, img_k[idx_shuffle],
                                    prototypes, args["vMF"])
    k = qk_p[:bsz, :ld][idx_unshuffle]

    cont_features = jnp.concatenate([q, k, buffers["queue"]], axis=0)
    cont_labels = jnp.concatenate(
        [pseudo_labels.astype(jnp.float32),
         pseudo_labels.astype(jnp.float32),
         buffers["queue_pseudo"]], axis=0)

    # dequeue and enqueue (assumes moco_queue % batch == 0, same as PiCO/MoCo)
    assert args["moco_queue"] % bsz == 0
    ptr = buffers["queue_ptr"][0]
    queue = lax.dynamic_update_slice(buffers["queue"], k, (ptr, jnp.int32(0)))
    queue_pseudo = lax.dynamic_update_slice(
        buffers["queue_pseudo"], pseudo_labels.astype(jnp.float32), (ptr,))
    new_ptr = (ptr + bsz) % args["moco_queue"]

    new_buffers = dict(queue=queue, queue_pseudo=queue_pseudo,
                       queue_ptr=jnp.reshape(new_ptr, (1,)).astype(jnp.int32),
                       prototypes=new_prototypes)
    new_state = dict(params_q=params_q, params_k=new_params_k, buffers=new_buffers)
    return (classfy_out, cluster_out, cont_features, cont_labels), new_state


# ----------------------------- Parameter init -----------------------------

def init_encoder_params(key, c_in, c_out, hid, num_class, low_dim):
    ks = jax.random.split(key, 4)
    return dict(
        w_conv=0.1 * jax.random.normal(ks[0], (c_out, c_in, 3, 3), jnp.float32),
        b_conv=jnp.zeros((c_out,), jnp.float32),
        w1=0.1 * jax.random.normal(ks[1], (c_out, hid), jnp.float32),
        b1=jnp.zeros((hid,), jnp.float32),
        wc=0.1 * jax.random.normal(ks[2], (hid, num_class), jnp.float32),
        bc=jnp.zeros((num_class,), jnp.float32),
        wp=0.1 * jax.random.normal(ks[3], (hid, low_dim), jnp.float32),
        bp=jnp.zeros((low_dim,), jnp.float32),
    )


# ----------------------------- Main -----------------------------

if __name__ == "__main__":
    key = jax.random.PRNGKey(0)
    args = dict(num_class=4, low_dim=32, moco_queue=16, vMF=0.1,
                piror=0.1, proto_m=0.99, moco_m=0.999)
    B, C, H, W = 8, 3, 8, 8
    HID, COUT = 32, 8

    # probe pl.Buffered(1) support once, outside any jit trace
    _probe_single_buffering()

    (k_params, k_imgq, k_imgk, k_pl, k_pl2,
     k_queue, k_qp, k_shuf) = jax.random.split(key, 8)

    params_q = init_encoder_params(k_params, C, COUT, HID,
                                   args["num_class"], args["low_dim"])
    # encoder_k initialized as an exact copy of encoder_q (param_k.copy_(param_q))
    params_k = jax.tree_util.tree_map(lambda p: p.copy(), params_q)

    queue = jax.random.normal(k_queue, (args["moco_queue"], args["low_dim"]),
                              jnp.float32)
    queue = queue / jnp.maximum(jnp.linalg.norm(queue, axis=1, keepdims=True), 1e-12)
    buffers = dict(
        queue=queue,
        queue_pseudo=jax.random.normal(k_qp, (args["moco_queue"],), jnp.float32),
        queue_ptr=jnp.zeros((1,), jnp.int32),
        prototypes=jnp.zeros((args["num_class"], args["low_dim"]), jnp.float32),
    )
    state = dict(params_q=params_q, params_k=params_k, buffers=buffers)

    img_q = jax.random.normal(k_imgq, (B, C, H, W), jnp.float32)
    img_k = jax.random.normal(k_imgk, (B, C, H, W), jnp.float32)
    # partial-label matrix: random 0/1 with at least one positive per row
    plabel = (jax.random.uniform(k_pl, (B, args["num_class"])) > 0.5).astype(jnp.float32)
    plabel = plabel.at[jnp.arange(B),
                       jax.random.randint(k_pl2, (B,), 0, args["num_class"])].set(1.0)

    run_eval = jax.jit(lambda st, iq: pico_forward(st, iq, args=args, eval_only=True))
    run_train = jax.jit(
        lambda st, iq, ik, plab, ky: pico_forward(st, iq, ik, plab, args,
                                                  eval_only=False, shuffle_key=ky))

    # eval_only path
    eval_out = run_eval(state, img_q)
    # training path
    (classfy_out, cluster_out, cont_features, cont_labels), new_state = run_train(
        state, img_q, img_k, plabel, k_shuf)

    jax.block_until_ready((eval_out, classfy_out, cluster_out,
                           cont_features, cont_labels, new_state))
    # TODO(synk): DDP concat_all_gather / cross-device shuffle has no single-chip
    # Pallas equivalent; the shuffle is reproduced with jax.random.permutation.
    print("KERNEL_OK")
</pallas_src>

<mosaic_0001>
module attributes {stable_mosaic.version = 11 : i64} {
  func.func @_k(%arg0: i32, %arg1: memref<8x128xf32, #tpu.memory_space<vmem>>, %arg2: memref<8x128xf32, #tpu.memory_space<vmem>>, %arg3: memref<8x128xf32, #tpu.memory_space<vmem>>) attributes {dimension_semantics = [#tpu.dimension_semantics<arbitrary>], iteration_bounds = array<i64: 2>, scalar_prefetch = 0 : i64, scratch_operands = 0 : i64, tpu.core_type = #tpu.core_type<tc>, window_params = [{transform_indices = @transform_0, window_bounds = array<i64: 8, 128>}, {pipeline_mode = #tpu.pipeline_mode<synchronous>, transform_indices = @transform_1, window_bounds = array<i64: 8, 128>}, {transform_indices = @transform_2, window_bounds = array<i64: 8, 128>}]} {
    %c0 = arith.constant 0 : index
    %c0_0 = arith.constant 0 : index
    %0 = vector.load %arg1[%c0, %c0_0] : memref<8x128xf32, #tpu.memory_space<vmem>>, vector<8x128xf32>
    %c0_1 = arith.constant 0 : index
    %c0_2 = arith.constant 0 : index
    %1 = vector.load %arg2[%c0_1, %c0_2] : memref<8x128xf32, #tpu.memory_space<vmem>>, vector<8x128xf32>
    %2 = arith.addf %0, %1 : vector<8x128xf32>
    %c0_3 = arith.constant 0 : index
    %c0_4 = arith.constant 0 : index
    %3 = vector.load %arg3[%c0_3, %c0_4] : memref<8x128xf32, #tpu.memory_space<vmem>>, vector<8x128xf32>
    tpu.vector_store %arg3[%c0_3, %c0_4], %2 {strides = array<i32>} : memref<8x128xf32, #tpu.memory_space<vmem>>, vector<8x128xf32>,
    return
  }
  func.func @transform_0(%arg0: i32) -> (i32, i32) {
    %c0_i32 = arith.constant 0 : i32
    %c0_i32_0 = arith.constant 0 : i32
    return %arg0, %c0_i32 : i32, i32
  }
  func.func @transform_1(%arg0: i32) -> (i32, i32) {
    %c0_i32 = arith.constant 0 : i32
    %c0_i32_0 = arith.constant 0 : i32
    %c0_i32_1 = arith.constant 0 : i32
    return %c0_i32, %c0_i32_0 : i32, i32
  }
  func.func @transform_2(%arg0: i32) -> (i32, i32) {
    %c0_i32 = arith.constant 0 : i32
    %c0_i32_0 = arith.constant 0 : i32
    return %arg0, %c0_i32 : i32, i32
  }
}

module attributes {stable_mosaic.version = 11 : i64} {
  func.func @_pico_encoder_kernel(%arg0: i32, %arg1: memref<512x27xbf16, #tpu.memory_space<vmem>>, %arg2: memref<27x128xbf16, #tpu.memory_space<vmem>>, %arg3: memref<1x128xf32, #tpu.memory_space<vmem>>, %arg4: memref<128x128xbf16, #tpu.memory_space<vmem>>, %arg5: memref<1x128xf32, #tpu.memory_space<vmem>>, %arg6: memref<128x128xf32, #tpu.memory_space<vmem>>, %arg7: memref<1x128xf32, #tpu.memory_space<vmem>>, %arg8: memref<128x128xf32, #tpu.memory_space<vmem>>, %arg9: memref<1x128xf32, #tpu.memory_space<vmem>>, %arg10: memref<128x128xf32, #tpu.memory_space<vmem>>, %arg11: memref<1x128xf32, #tpu.memory_space<vmem>>, %arg12: memref<8x128xf32, #tpu.memory_space<vmem>>, %arg13: memref<8x128xf32, #tpu.memory_space<vmem>>, %arg14: memref<8x128xf32, #tpu.memory_space<vmem>>, %arg15: memref<8x128xbf16, #tpu.memory_space<vmem>>) attributes {dimension_semantics = [#tpu.dimension_semantics<parallel>], iteration_bounds = array<i64: 1>, scalar_prefetch = 0 : i64, scratch_operands = 0 : i64, tpu.core_type = #tpu.core_type<tc>, window_params = [{transform_indices = @transform_0, window_bounds = array<i64: 512, 27>}, {pipeline_mode = #tpu.pipeline_mode<synchronous>, transform_indices = @transform_1, window_bounds = array<i64: 27, 128>}, {pipeline_mode = #tpu.pipeline_mode<synchronous>, transform_indices = @transform_2, window_bounds = array<i64: 1, 128>}, {pipeline_mode = #tpu.pipeline_mode<synchronous>, transform_indices = @transform_3, window_bounds = array<i64: 128, 128>}, {pipeline_mode = #tpu.pipeline_mode<synchronous>, transform_indices = @transform_4, window_bounds = array<i64: 1, 128>}, {pipeline_mode = #tpu.pipeline_mode<synchronous>, transform_indices = @transform_5, window_bounds = array<i64: 128, 128>}, {pipeline_mode = #tpu.pipeline_mode<synchronous>, transform_indices = @transform_6, window_bounds = array<i64: 1, 128>}, {pipeline_mode = #tpu.pipeline_mode<synchronous>, transform_indices = @transform_7, window_bounds = array<i64: 128, 128>}, {pipeline_mode = #tpu.pipeline_mode<synchronous>, transform_indices = @transform_8, window_bounds = array<i64: 1, 128>}, {pipeline_mode = #tpu.pipeline_mode<synchronous>, transform_indices = @transform_9, window_bounds = array<i64: 128, 128>}, {pipeline_mode = #tpu.pipeline_mode<synchronous>, transform_indices = @transform_10, window_bounds = array<i64: 1, 128>}, {transform_indices = @transform_11, window_bounds = array<i64: 8, 128>}, {transform_indices = @transform_12, window_bounds = array<i64: 8, 128>}, {transform_indices = @transform_13, window_bounds = array<i64: 8, 128>}, {transform_indices = @transform_14, window_bounds = array<i64: 8, 128>}]} {
    %c0 = arith.constant 0 : index
    %c0_0 = arith.constant 0 : index
    %0 = vector.load %arg1[%c0, %c0_0] : memref<512x27xbf16, #tpu.memory_space<vmem>>, vector<512x27xbf16>
    %c0_1 = arith.constant 0 : index
    %c0_2 = arith.constant 0 : index
    %1 = vector.load %arg2[%c0_1, %c0_2] : memref<27x128xbf16, #tpu.memory_space<vmem>>, vector<27x128xbf16>
    %cst = arith.constant dense<0.000000e+00> : vector<512x128xf32>
    %2 = tpu.matmul %0, %1, %cst {dimension_numbers = #tpu.dot_dimension_numbers<[1], [0], [0], [1], [0, 0, 1, 1], [], []>} : vector<512x27xbf16>, vector<27x128xbf16>, vector<512x128xf32> -> vector<512x128xf32>
    %c0_3 = arith.constant 0 : index
    %c0_4 = arith.constant 0 : index
    %3 = vector.load %arg3[%c0_3, %c0_4] : memref<1x128xf32, #tpu.memory_space<vmem>>, vector<1x128xf32>
    %4 = vector.broadcast %3 : vector<1x128xf32> to vector<512x128xf32>
    %5 = arith.addf %2, %4 : vector<512x128xf32>
    %cst_5 = arith.constant 0.000000e+00 : f32
    %6 = vector.broadcast %cst_5 : f32 to vector<512x128xf32>
    %7 = arith.maximumf %5, %6 : vector<512x128xf32>
    %8 = vector.shape_cast %7 : vector<512x128xf32> to vector<8x64x128xf32>
    %cst_6 = arith.constant dense<0.000000e+00> : vector<8x128xf32>
    %9 = vector.multi_reduction <add>, %8, %cst_6 [1] : vector<8x64x128xf32> to vector<8x128xf32>
    %cst_7 = arith.constant 6.400000e+01 : f32
    %10 = vector.broadcast %cst_7 : f32 to vector<8x128xf32>
    %11 = arith.divf %9, %10 : vector<8x128xf32>
    %12 = arith.truncf %11 : vector<8x128xf32> to vector<8x128xbf16>
    %c0_8 = arith.constant 0 : index
    %c0_9 = arith.constant 0 : index
    %13 = vector.load %arg4[%c0_8, %c0_9] : memref<128x128xbf16, #tpu.memory_space<vmem>>, vector<128x128xbf16>
    %cst_10 = arith.constant dense<0.000000e+00> : vector<8x128xf32>
    %14 = tpu.matmul %12, %13, %cst_10 {dimension_numbers = #tpu.dot_dimension_numbers<[1], [0], [0], [1], [0, 0, 1, 1], [], []>} : vector<8x128xbf16>, vector<128x128xbf16>, vector<8x128xf32> -> vector<8x128xf32>
    %c0_11 = arith.constant 0 : index
    %c0_12 = arith.constant 0 : index
    %15 = vector.load %arg5[%c0_11, %c0_12] : memref<1x128xf32, #tpu.memory_space<vmem>>, vector<1x128xf32>
    %16 = vector.broadcast %15 : vector<1x128xf32> to vector<8x128xf32>
    %17 = arith.addf %14, %16 : vector<8x128xf32>
    %cst_13 = arith.constant 0.000000e+00 : f32
    %18 = vector.broadcast %cst_13 : f32 to vector<8x128xf32>
    %19 = arith.maximumf %17, %18 : vector<8x128xf32>
    %20 = arith.truncf %19 : vector<8x128xf32> to vector<8x128xbf16>
    %c0_14 = arith.constant 0 : index
    %c0_15 = arith.constant 0 : index
    %21 = vector.load %arg15[%c0_14, %c0_15] : memref<8x128xbf16, #tpu.memory_space<vmem>>, vector<8x128xbf16>
    tpu.vector_store %arg15[%c0_14, %c0_15], %20 {strides = array<i32>} : memref<8x128xbf16, #tpu.memory_space<vmem>>, vector<8x128xbf16>,
    %c0_16 = arith.constant 0 : index
    %c0_17 = arith.constant 0 : index
    %22 = vector.load %arg6[%c0_16, %c0_17] : memref<128x128xf32, #tpu.memory_space<vmem>>, vector<128x128xf32>
    %cst_18 = arith.constant dense<0.000000e+00> : vector<8x128xf32>
    %23 = tpu.matmul %19, %22, %cst_18 {dimension_numbers = #tpu.dot_dimension_numbers<[1], [0], [0], [1], [0, 0, 1, 1], [], []>} : vector<8x128xf32>, vector<128x128xf32>, vector<8x128xf32> -> vector<8x128xf32>
    %c0_19 = arith.constant 0 : index
    %c0_20 = arith.constant 0 : index
    %24 = vector.load %arg7[%c0_19, %c0_20] : memref<1x128xf32, #tpu.memory_space<vmem>>, vector<1x128xf32>
    %25 = vector.broadcast %24 : vector<1x128xf32> to vector<8x128xf32>
    %26 = arith.addf %23, %25 : vector<8x128xf32>
    %cst_21 = arith.constant dense<0xFF800000> : vector<8xf32>
    %27 = vector.multi_reduction <maximumf>, %26, %cst_21 [1] : vector<8x128xf32> to vector<8xf32>
    %28 = vector.shape_cast %27 : vector<8xf32> to vector<8x1xf32>
    %29 = vector.broadcast %28 : vector<8x1xf32> to vector<8x128xf32>
    %30 = arith.subf %26, %29 : vector<8x128xf32>
    %31 = math.exp %30 : vector<8x128xf32>
    %cst_22 = arith.constant dense<0.000000e+00> : vector<8xf32>
    %32 = vector.multi_reduction <add>, %31, %cst_22 [1] : vector<8x128xf32> to vector<8xf32>
    %33 = vector.shape_cast %32 : vector<8xf32> to vector<8x1xf32>
    %34 = vector.broadcast %33 : vector<8x1xf32> to vector<8x128xf32>
    %35 = arith.divf %31, %34 : vector<8x128xf32>
    %c0_23 = arith.constant 0 : index
    %c0_24 = arith.constant 0 : index
    %36 = vector.load %arg12[%c0_23, %c0_24] : memref<8x128xf32, #tpu.memory_space<vmem>>, vector<8x128xf32>
    tpu.vector_store %arg12[%c0_23, %c0_24], %35 {strides = array<i32>} : memref<8x128xf32, #tpu.memory_space<vmem>>, vector<8x128xf32>,
    %c0_25 = arith.constant 0 : index
    %c0_26 = arith.constant 0 : index
    %37 = vector.load %arg8[%c0_25, %c0_26] : memref<128x128xf32, #tpu.memory_space<vmem>>, vector<128x128xf32>
    %cst_27 = arith.constant dense<0.000000e+00> : vector<8x128xf32>
    %38 = tpu.matmul %19, %37, %cst_27 {dimension_numbers = #tpu.dot_dimension_numbers<[1], [0], [0], [1], [0, 0, 1, 1], [], []>} : vector<8x128xf32>, vector<128x128xf32>, vector<8x128xf32> -> vector<8x128xf32>
    %c0_28 = arith.constant 0 : index
    %c0_29 = arith.constant 0 : index
    %39 = vector.load %arg9[%c0_28, %c0_29] : memref<1x128xf32, #tpu.memory_space<vmem>>, vector<1x128xf32>
    %40 = vector.broadcast %39 : vector<1x128xf32> to vector<8x128xf32>
    %41 = arith.addf %38, %40 : vector<8x128xf32>
    %42 = arith.mulf %41, %41 : vector<8x128xf32>
    %cst_30 = arith.constant dense<0.000000e+00> : vector<8xf32>
    %43 = vector.multi_reduction <add>, %42, %cst_30 [1] : vector<8x128xf32> to vector<8xf32>
    %44 = vector.shape_cast %43 : vector<8xf32> to vector<8x1xf32>
    %cst_31 = arith.constant 1.000000e-24 : f32
    %45 = vector.broadcast %cst_31 : f32 to vector<8x1xf32>
    %46 = arith.maximumf %44, %45 : vector<8x1xf32>
    %47 = math.rsqrt %46 : vector<8x1xf32>
    %48 = vector.broadcast %47 : vector<8x1xf32> to vector<8x128xf32>
    %49 = arith.mulf %41, %48 : vector<8x128xf32>
    %c0_32 = arith.constant 0 : index
    %c0_33 = arith.constant 0 : index
    %50 = vector.load %arg14[%c0_32, %c0_33] : memref<8x128xf32, #tpu.memory_space<vmem>>, vector<8x128xf32>
    tpu.vector_store %arg14[%c0_32, %c0_33], %49 {strides = array<i32>} : memref<8x128xf32, #tpu.memory_space<vmem>>, vector<8x128xf32>,
    %c0_34 = arith.constant 0 : index
    %c0_35 = arith.constant 0 : index
    %51 = vector.load %arg10[%c0_34, %c0_35] : memref<128x128xf32, #tpu.memory_space<vmem>>, vector<128x128xf32>
    %cst_36 = arith.constant dense<0.000000e+00> : vector<8x128xf32>
    %52 = tpu.matmul %49, %51, %cst_36 {dimension_numbers = #tpu.dot_dimension_numbers<[1], [1], [0], [0], [0, 0, 1, 0], [], []>} : vector<8x128xf32>, vector<128x128xf32>, vector<8x128xf32> -> vector<8x128xf32>
    %cst_37 = arith.constant 1.000000e+01 : f32
    %53 = vector.broadcast %cst_37 : f32 to vector<8x128xf32>
    %54 = arith.mulf %52, %53 : vector<8x128xf32>
    %c0_38 = arith.constant 0 : index
    %c0_39 = arith.constant 0 : index
    %55 = vector.load %arg11[%c0_38, %c0_39] : memref<1x128xf32, #tpu.memory_space<vmem>>, vector<1x128xf32>
    %56 = vector.broadcast %55 : vector<1x128xf32> to vector<8x128xf32>
    %57 = arith.addf %54, %56 : vector<8x128xf32>
    %cst_40 = arith.constant dense<0xFF800000> : vector<8xf32>
    %58 = vector.multi_reduction <maximumf>, %57, %cst_40 [1] : vector<8x128xf32> to vector<8xf32>
    %59 = vector.shape_cast %58 : vector<8xf32> to vector<8x1xf32>
    %60 = vector.broadcast %59 : vector<8x1xf32> to vector<8x128xf32>
    %61 = arith.subf %57, %60 : vector<8x128xf32>
    %62 = math.exp %61 : vector<8x128xf32>
    %cst_41 = arith.constant dense<0.000000e+00> : vector<8xf32>
    %63 = vector.multi_reduction <add>, %62, %cst_41 [1] : vector<8x128xf32> to vector<8xf32>
    %64 = vector.shape_cast %63 : vector<8xf32> to vector<8x1xf32>
    %65 = vector.broadcast %64 : vector<8x1xf32> to vector<8x128xf32>
    %66 = arith.divf %62, %65 : vector<8x128xf32>
    %c0_42 = arith.constant 0 : index
    %c0_43 = arith.constant 0 : index
    %67 = vector.load %arg13[%c0_42, %c0_43] : memref<8x128xf32, #tpu.memory_space<vmem>>, vector<8x128xf32>
    tpu.vector_store %arg13[%c0_42, %c0_43], %66 {strides = array<i32>} : memref<8x128xf32, #tpu.memory_space<vmem>>, vector<8x128xf32>,
    return
  }
  func.func @transform_0(%arg0: i32) -> (i32, i32) {
    %c0_i32 = arith.constant 0 : i32
    %c0_i32_0 = arith.constant 0 : i32
    return %arg0, %c0_i32 : i32, i32
  }
  func.func @transform_1(%arg0: i32) -> (i32, i32) {
    %c0_i32 = arith.constant 0 : i32
    %c0_i32_0 = arith.constant 0 : i32
    %c0_i32_1 = arith.constant 0 : i32
    return %c0_i32, %c0_i32_0 : i32, i32
  }
  func.func @transform_2(%arg0: i32) -> (i32, i32) {
    %c0_i32 = arith.constant 0 : i32
    %c0_i32_0 = arith.constant 0 : i32
    %c0_i32_1 = arith.constant 0 : i32
    return %c0_i32, %c0_i32_0 : i32, i32
  }
  func.func @transform_3(%arg0: i32) -> (i32, i32) {
    %c0_i32 = arith.constant 0 : i32
    %c0_i32_0 = arith.constant 0 : i32
    %c0_i32_1 = arith.constant 0 : i32
    return %c0_i32, %c0_i32_0 : i32, i32
  }
  func.func @transform_4(%arg0: i32) -> (i32, i32) {
    %c0_i32 = arith.constant 0 : i32
    %c0_i32_0 = arith.constant 0 : i32
    %c0_i32_1 = arith.constant 0 : i32
    return %c0_i32, %c0_i32_0 : i32, i32
  }
  func.func @transform_5(%arg0: i32) -> (i32, i32) {
    %c0_i32 = arith.constant 0 : i32
    %c0_i32_0 = arith.constant 0 : i32
    %c0_i32_1 = arith.constant 0 : i32
    return %c0_i32, %c0_i32_0 : i32, i32
  }
  func.func @transform_6(%arg0: i32) -> (i32, i32) {
    %c0_i32 = arith.constant 0 : i32
    %c0_i32_0 = arith.constant 0 : i32
    %c0_i32_1 = arith.constant 0 : i32
    return %c0_i32, %c0_i32_0 : i32, i32
  }
  func.func @transform_7(%arg0: i32) -> (i32, i32) {
    %c0_i32 = arith.constant 0 : i32
    %c0_i32_0 = arith.constant 0 : i32
    %c0_i32_1 = arith.constant 0 : i32
    return %c0_i32, %c0_i32_0 : i32, i32
  }
  func.func @transform_8(%arg0: i32) -> (i32, i32) {
    %c0_i32 = arith.constant 0 : i32
    %c0_i32_0 = arith.constant 0 : i32
    %c0_i32_1 = arith.constant 0 : i32
    return %c0_i32, %c0_i32_0 : i32, i32
  }
  func.func @transform_9(%arg0: i32) -> (i32, i32) {
    %c0_i32 = arith.constant 0 : i32
    %c0_i32_0 = arith.constant 0 : i32
    %c0_i32_1 = arith.constant 0 : i32
    return %c0_i32, %c0_i32_0 : i32, i32
  }
  func.func @transform_10(%arg0: i32) -> (i32, i32) {
    %c0_i32 = arith.constant 0 : i32
    %c0_i32_0 = arith.constant 0 : i32
    %c0_i32_1 = arith.constant 0 : i32
    return %c0_i32, %c0_i32_0 : i32, i32
  }
  func.func @transform_11(%arg0: i32) -> (i32, i32) {
    %c0_i32 = arith.constant 0 : i32
    %c0_i32_0 = arith.constant 0 : i32
    return %arg0, %c0_i32 : i32, i32
  }
  func.func @transform_12(%arg0: i32) -> (i32, i32) {
    %c0_i32 = arith.constant 0 : i32
    %c0_i32_0 = arith.constant 0 : i32
    return %arg0, %c0_i32 : i32, i32
  }
  func.func @transform_13(%arg0: i32) -> (i32, i32) {
    %c0_i32 = arith.constant 0 : i32
    %c0_i32_0 = arith.constant 0 : i32
    return %arg0, %c0_i32 : i32, i32
  }
  func.func @transform_14(%arg0: i32) -> (i32, i32) {
    %c0_i32 = arith.constant 0 : i32
    %c0_i32_0 = arith.constant 0 : i32
    return %arg0, %c0_i32 : i32, i32
  }
}

</mosaic_0001>

<bundles_post_ra>
// kernel: tpu_custom_call.1
= control target key start
LH: loop header
LB: loop body
LE: loop exit
PB: predicated region body
PF: predicated region fallthrough
CT: control target
= control target key end

     0   :  { %7 = vsyncpa [#allocation3], 0  ;;  %s633_s0 = inlined_call_operand.hbm [shape: f32[16,128], index: 0, kind: input, shape index: {}]   ;;  %s634_s1 = inlined_call_operand.hbm [shape: f32[8,128], index: 1, kind: input, shape index: {}]   ;;  %s635_s2 = inlined_call_operand.hbm [shape: f32[16,128], index: 2, kind: output, shape index: {}]  }
   0x1   :  { %9 = vsyncpa [#allocation3 + $0x1], 0 }
   0x2   :  { %10 = vsyncpa [#allocation6], 0 }
   0x3   :  { %11 = vsyncpa [#allocation4], 0 }
   0x4   :  { %13 = vsyncpa [#allocation4 + $0x1], 0  ;;  %s495_s9 = smov 0   ;;  %s497_s10 = smov 0  }
   0x5   :  { %s499_s11 = smov 0   ;;  %s501_s12 = smov 0  }
   0x6 LB: > { %s516_s13 = sadd.s32 4294967295, %s477_s12   ;;  %s276_s14 = sadd.s32 4294967294, %s477_s12   ;;  %s477_s12 = sphi %s501_s12, %s645_s12   ;;  %s473_s11 = sphi %s499_s11, %s644_s11   ;;  %s469_s10 = sphi %s497_s10, %s643_s10   ;;  %s465_s9 = sphi %s495_s9, %s642_s9  }
   0x7   : > { %p39_p0 = scmp.ne.s32.totalorder %s469_s10, %s465_s9  ;;  %p40_p1 = scmp.eq.s32.totalorder %s516_s13, 0 }
   0x8   : > { %p84_p2 = scmp.eq.s32.totalorder %s516_s13, 1  ;;  %p90_p3 = scmp.eq.s32.totalorder %s276_s14, 1 }
   0x9   : > { %p525_p4 = por %p40_p1, %p39_p0  ;;  %p277_p5 = scmp.ge.s32.totalorder %s477_s12, 1 }
   0xa   : > { %p530_p6 = por %p90_p3, %p39_p0  ;;  %p97_p7 = scmp.lt.s32.totalorder %s477_s12, 3 }
   0xb   : > { %s109_s19 = sshll.u32 %s634_s1, 4  ;;  %s479_s21 = smov [#allocation5]   ;;  %s110_s19 = int_to_ptr.hbm [resolvable:$true] %s109_s19 }
   0xc   : > { %p538_p8 = pnand %p277_p5, %p97_p7  ;;  %s111_s22 = sshll.u32 %s479_s21, 4  ;;  %s112_s22 = int_to_ptr.vmem [resolvable:$true] %s111_s22 }
   0xd   : > { %s548_s23 = sadd.s32 1, %s477_s12   ;;  %s26_s24 = sadd.s32 1, %s473_s11 }
   0xe   : > { %p298_p10 = pneg %p538_p8  ;;  %s23_s25 = ssub.s32 %s477_s12, %s548_s23 }
   0xf   : > { %p24_p12 = scmp.eq.s32.totalorder %s23_s25, 0  ;;  %p33_p13 = scmp.ne.s32.totalorder %s473_s11, %s469_s10 }
  0x10   : > { %p299_p11 = pnand %p298_p10, %p40_p1  ;;  %p34_p0 = scmp.eq.s32.totalorder %s477_s12, 0 }
  0x11   : > { %s557_s26 = scalar_select %p24_p12, %s473_s11, %s26_s24  }
  0x12   : > { %301 = dma.hbm_to_vmem [thread:$0]  (!%p299_p11), %s110_s19, 128, %s112_s22, [#allocation6]  }
  0x13   : > { %p561_p3 = por %p84_p2, %p33_p13  ;;  %p311_p5 = scmp.lt.s32.totalorder %s477_s12, 2 }
  0x14   : > { %s122_s28 = sand.u32 1, %s473_s11   ;;  %s281_s29 = sshll.u32 %s477_s12, 3 }
  0x15   : > { %p35_p7 = por %p34_p0, %p33_p13  ;;  %s280_s30 = sshll.u32 %s122_s28, 3 }
  0x16   : > { %s130_s5 = scalar_lea.hbm %s633_s0, %s281_s29  ;;  %s126_s7 = scalar_lea.vmem [#allocation2], %s280_s30 }
  0x17   : > { %s132_s6 = sshll.u32 %s130_s5, 4  ;;  %s134_s8 = sshll.u32 %s126_s7, 4  ;;  %s133_s6 = int_to_ptr.hbm [resolvable:$true] %s132_s6  ;;  %s135_s8 = int_to_ptr.vmem [resolvable:$true] %s134_s8 }
  0x18   : > { %p571_p10 = pnand %p311_p5, %p35_p7  ;;  %s123_s17 = scalar_lea.sflag [#allocation3], %s122_s28 }
  0x19   : > { %s377_s18 = sshra.s32 %s133_s6, 4  ;;  %s384_s24 = scalar_lea.hbm %s633_s0, 16  ;;  %s378_s18 = int_to_ptr.hbm [resolvable:$true] %s377_s18 }
  0x1a   : > { %s379_s19 = scalar_lea.hbm %s378_s18, 8  ;;  %p381_p11 = pneg %p571_p10 }
  0x1b   : > { %p380_p2 = scmp.ne.s32.totalorder %s378_s18, %s379_s19  ;;  %p385_p0 = scmp.lt.s32.totalorder %s378_s18, %s633_s0 }
  0x1c   : > { %p386_p5 = scmp.lt.s32.totalorder %s384_s24, %s379_s19 }
  0x1d   : > { %p382_p12 = pnand %p381_p11, %p380_p2 }
  0x1e   : > { %p387_p7 = por %p386_p5, %p385_p0 }
  0x1f   : > { %p383_p13 = pneg %p382_p12 }
  0x21   : > { %p388_p9 = pnand %p387_p7, %p383_p13 }
  0x23   : > { %391 = shalt.err (!%p388_p9)
}
  0x24   : > { %305 = dma.hbm_to_vmem [thread:$0]  (!%p571_p10), %s133_s6, 128, %s135_s8, %s123_s17  }
  0x25   : > { %143 = sbr.rel (%p538_p8) target bundleno = 60 (0x3c), region = 28  ;;  %s588_s28 = sand.u32 (!%p538_p8), 1, %s469_s10  }
  0x26   : > { %s283_s30 = sshll.u32 (!%p538_p8), %s588_s28, 3  ;;  %s146_s3 = scalar_lea.sflag (!%p538_p8), [#allocation3], %s588_s28 }
  0x27   : > { %s149_s4 = scalar_lea.vmem (!%p538_p8), [#allocation2], %s283_s30 }
  0x2a   : > { %452 = dma.done.wait (%p525_p4), %s146_s3, 128  }
  0x2b   : > { %454 = vsyncadd (%p525_p4), %s146_s3, 4294967168 }
  0x2c   : > { %456 = dma.done.wait (%p40_p1), [#allocation6], 128  }
  0x2d   : > { %458 = vsyncadd (%p40_p1), [#allocation6], 4294967168  ;;  %s287_s20 = sshll.u32 %s516_s13, 3  ;;  %s175_s8 = scalar_lea.vmem [#allocation7], %s283_s30  ;;  %v176_v0 = vld [vmem:[%s149_s4] sm:$0xff]  ;;  %v177_v1 = vld [vmem:[#allocation5] sm:$0xff] }
  0x2e   : > { %s191_s7 = scalar_lea.hbm %s635_s2, %s287_s20  ;;  %s193_s14 = sshll.u32 %s175_s8, 4  ;;  %v178_v2 = vadd.f32 %v177_v1, %v176_v0  ;;  %s194_s14 = int_to_ptr.vmem [resolvable:$true] %s193_s14 }
  0x2f   : > { %s195_s17 = sshll.u32 %s191_s7, 4  ;;  %s181_s15 = scalar_lea.sflag [#allocation4], %s588_s28  ;;  %s196_s17 = int_to_ptr.hbm [resolvable:$true] %s195_s17 }
  0x30   : > { %179 = vst [vmem:[%s175_s8] sm:$0xff] %v178_v2  ;;  %s421_s18 = sshra.s32 %s196_s17, 4  ;;  %s427_s22 = scalar_lea.hbm %s635_s2, 16  ;;  %s422_s18 = int_to_ptr.hbm [resolvable:$true] %s421_s18 }
  0x31   : > { %s423_s19 = scalar_lea.hbm %s422_s18, 8  ;;  %p428_p9 = scmp.lt.s32.totalorder %s422_s18, %s635_s2 }
  0x32   : > { %p424_p1 = scmp.ne.s32.totalorder %s422_s18, %s423_s19  ;;  %p429_p10 = scmp.lt.s32.totalorder %s427_s22, %s423_s19 }
  0x34   : > { %p425_p4 = pnand %p424_p1, %p561_p3  ;;  %p430_p2 = por %p429_p10, %p428_p9 }
  0x36   : > { %p426_p8 = pneg %p425_p4 }
  0x38   : > { %p431_p11 = pnand %p430_p2, %p426_p8 }
  0x3a   : > { %434 = shalt.err (!%p431_p11)
}
  0x3b   : > { %296 = dma.vmem_to_hbm [thread:$0]  (%p561_p3), %s194_s14, 128, %s196_s17, %s181_s15  }
  0x3c PF: > { %s207_s29 = sand.u32 1, %s465_s9   ;;  %p641_p12 = scmp.ge.s32.totalorder %s477_s12, 2 }
  0x3d   : > { %s208_s28 = scalar_lea.sflag [#allocation4], %s207_s29 }
  0x3e   : > { %p307_p13 = pnand %p641_p12, %p530_p6 }
  0x40   : > { %p308_p0 = pneg %p307_p13 }
  0x42   : > { %460 = dma.done.wait (%p308_p0), %s208_s28, 128  }
  0x43   : > { %462 = vsyncadd (%p308_p0), %s208_s28, 4294967168  ;;  %p16_p5 = scmp.ge.s32.totalorder %s548_s23, 4   ;;  %s642_s9 = smov %s469_s10 }
  0x44   : > { %s643_s10 = smov %s473_s11  ;;  %s644_s11 = smov %s557_s26 }
  0x45   : > { %s645_s12 = smov %s548_s23  ;;  %18 = sbr.rel (!%p16_p5) target bundleno = 6 (0x6), region = 77 }
  0x4a   :  { %214 = vsyncpa [#allocation3], 1 }
  0x4b   :  { %216 = vsyncpa [#allocation3 + $0x1], 1 }
  0x4c   :  { %217 = vsyncpa [#allocation6], 1 }
  0x4d   :  { %218 = vsyncpa [#allocation4], 1 }
  0x4e   :  { %220 = vsyncpa [#allocation4 + $0x1], 1 }

// kernel: _lambda_.1
= control target key start
LH: loop header
LB: loop body
LE: loop exit
PB: predicated region body
PF: predicated region fallthrough
CT: control target
= control target key end

     0   :  { %20 = vsyncpa [#allocation3], 0  ;;  %vm385_vm0 = vcmask 1044480   ;;  %vm386_vm1 = vcmask 1045504   ;;  %v1413_v3 = vmov 65535   ;;  %s1940_s0 = inlined_call_operand.vmem [shape: bf16[512,27], index: 0, kind: input, shape index: {}]   ;;  %s1941_s1 = inlined_call_operand.vmem [shape: bf16[27,128], index: 1, kind: input, shape index: {}]   ;;  %s1942_s2 = inlined_call_operand.vmem [shape: f32[1,128], index: 2, kind: input, shape index: {}]   ;;  %s1943_s3 = inlined_call_operand.vmem [shape: bf16[128,128], index: 3, kind: input, shape index: {}]   ;;  %s1944_s4 = inlined_call_operand.vmem [shape: f32[1,128], index: 4, kind: input, shape index: {}]   ;;  %s1945_s5 = inlined_call_operand.vmem [shape: f32[128,128], index: 5, kind: input, shape index: {}]   ;;  %s1946_s6 = inlined_call_operand.vmem [shape: f32[1,128], index: 6, kind: input, shape index: {}]   ;;  %s1947_s7 = inlined_call_operand.vmem [shape: f32[128,128], index: 7, kind: input, shape index: {}]   ;;  %s1948_s8 = inlined_call_operand.vmem [shape: f32[1,128], index: 8, kind: input, shape index: {}]   ;;  %s1949_s9 = inlined_call_operand.vmem [shape: f32[128,128], index: 9, kind: input, shape index: {}]   ;;  %s1950_s10 = inlined_call_operand.vmem [shape: f32[1,128], index: 10, kind: input, shape index: {}]   ;;  %s1951_s11 = inlined_call_operand.vmem [shape: f32[8,128], index: 11, kind: output, shape index: {0}]   ;;  %s1952_s12 = inlined_call_operand.vmem [shape: f32[8,128], index: 12, kind: output, shape index: {1}]   ;;  %s1953_s13 = inlined_call_operand.hbm [shape: f32[8,128], index: 13, kind: output, shape index: {2}]   ;;  %s1954_s14 = inlined_call_operand.hbm [shape: bf16[8,128], index: 14, kind: output, shape index: {3}]  }
   0x1   :  { %v1226_v0 = vld [vmem:[%s1941_s1 + $0x8] sm:$0xf]  ;;  %v1325_v1 = vld [vmem:[%s1941_s1 + $0x8] sm:$0x30]  ;;  %v387_v4 = vsel %vm385_vm0, 4294967295, %v1413_v3  ;;  %v1324_v7 = vld [vmem:[%s1941_s1] sm:$0xff] }
   0x2   :  { %v1227_v2 = vor.u32 %v1325_v1, %v1226_v0  ;;  %v388_v5 = vsel %vm386_vm1, %v387_v4, 0 }
   0x4   :  { %v390_v6 = vand.u32 %v1227_v2, %v388_v5 }
   0x6   :  { %398 = vmatpush.bf16.msra.mxu0 %v390_v6  ;;  %1334 = vmatpush.bf16.msra.mxu1 %v390_v6 }
   0x7   :  { %21 = vsyncpa [#allocation5], 0  ;;  %1335 = vmatpush.bf16.msra.mxu2 %v390_v6  ;;  %1336 = vmatpush.bf16.msra.mxu3 %v390_v6  ;;  %v1292_v8 = vld [vmem:[%s1940_s0] sm:$0xff]  ;;  %v1303_v9 = vld [vmem:[%s1940_s0 + $0x58] sm:$0xff]  ;;  %vm288_vm2 = vcmask 220160   ;;  %vm788_vm4 = vcmask 1041409  }
   0x8   :  { %v1305_v10 = vld [vmem:[%s1940_s0 + $0x68] sm:$0xff]  ;;  %v1315_v11 = vld [vmem:[%s1940_s0 + $0xb8] sm:$0xff]  ;;  %v1304_v13 = vld [vmem:[%s1940_s0 + $0x60] sm:$0xff]  ;;  %vm790_vm5 = vcmask 1042434   ;;  %vm792_vm6 = vcmask 1043459   ;;  %vm794_vm7 = vcmask 1044484  }
   0x9   :  { %v1293_v12 = vld [vmem:[%s1940_s0 + $0x8] sm:$0xff]  ;;  %v1306_v14 = vld [vmem:[%s1940_s0 + $0x70] sm:$0xff]  ;;  %v1316_v15 = vld [vmem:[%s1940_s0 + $0xc0] sm:$0xff]  ;;  %vm796_vm8 = vcmask 1045509   ;;  %vm798_vm9 = vcmask 1046534   ;;  %vm800_vm10 = vcmask 1047559  }
   0xa   :  { %399 = vmatpush.bf16.msra.mxu0 %v1324_v7  ;;  %1337 = vmatpush.bf16.msra.mxu1 %v1324_v7  ;;  %v1294_v16 = vld [vmem:[%s1940_s0 + $0x10] sm:$0xff]  ;;  %v1307_v17 = vld [vmem:[%s1940_s0 + $0x78] sm:$0xff]  ;;  %v1317_v18 = vld [vmem:[%s1940_s0 + $0xc8] sm:$0xff]  ;;  %s1416_s27 = smov [#allocation4]   ;;  %s1074_s30 = sshll.u32 %s1954_s14, 4  ;;  %s1075_s30 = int_to_ptr.hbm [resolvable:$true] %s1074_s30 }
   0xb   :  { %1338 = vmatpush.bf16.msra.mxu2 %v1324_v7  ;;  %1339 = vmatpush.bf16.msra.mxu3 %v1324_v7  ;;  %v1295_v19 = vld [vmem:[%s1940_s0 + $0x18] sm:$0xff]  ;;  %v1308_v20 = vld [vmem:[%s1940_s0 + $0x80] sm:$0xff]  ;;  %v1318_v21 = vld [vmem:[%s1940_s0 + $0xd0] sm:$0xff]  ;;  %s1072_s28 = sshll.u32 %s1416_s27, 4  ;;  %s1073_s28 = int_to_ptr.vmem [resolvable:$true] %s1072_s28 }
   0xc   :  { %v1296_v22 = vld [vmem:[%s1940_s0 + $0x20] sm:$0xff]  ;;  %v1309_v23 = vld [vmem:[%s1940_s0 + $0x88] sm:$0xff]  ;;  %v1319_v24 = vld [vmem:[%s1940_s0 + $0xd8] sm:$0xff] }
   0xd   :  { %1228 = vmatmul.msk.bf16.vlgmr.msra.gmra.mxu0 %vm288_vm2, %v1292_v8  ;;  %1239 = vmatmul.msk.bf16.vlgmr.msra.gmra.mxu1 %vm288_vm2, %v1303_v9  ;;  %v1297_v25 = vld [vmem:[%s1940_s0 + $0x28] sm:$0xff]  ;;  %v1310_v26 = vld [vmem:[%s1940_s0 + $0x90] sm:$0xff]  ;;  %v1320_v27 = vld [vmem:[%s1940_s0 + $0xe0] sm:$0xff] }
   0xe   :  { %1241 = vmatmul.msk.bf16.vlgmr.msra.gmra.mxu2 %vm288_vm2, %v1305_v10  ;;  %1251 = vmatmul.msk.bf16.vlgmr.msra.gmra.mxu3 %vm288_vm2, %v1315_v11  ;;  %v1298_v28 = vld [vmem:[%s1940_s0 + $0x30] sm:$0xff]  ;;  %v1311_v29 = vld [vmem:[%s1940_s0 + $0x98] sm:$0xff]  ;;  %v1321_v30 = vld [vmem:[%s1940_s0 + $0xe8] sm:$0xff] }
   0xf   :  { %v1299_v31 = vld [vmem:[%s1940_s0 + $0x38] sm:$0xff]  ;;  %v1312_v32 = vld [vmem:[%s1940_s0 + $0xa0] sm:$0xff]  ;;  %v1322_v33 = vld [vmem:[%s1940_s0 + $0xf0] sm:$0xff] }
  0x10   :  { %v1300_v34 = vld [vmem:[%s1940_s0 + $0x40] sm:$0xff]  ;;  %v1313_v37 = vld [vmem:[%s1940_s0 + $0xa8] sm:$0xff]  ;;  %v1323_v38 = vld [vmem:[%s1940_s0 + $0xf8] sm:$0xff] }
  0x11   :  { %v1619_v39 = vld [vmem:[%s1942_s2] ss:$0 sm:$0xff]  ;;  %v1301_v51 = vld [vmem:[%s1940_s0 + $0x48] sm:$0xff]  ;;  %v1314_v54 = vld [vmem:[%s1940_s0 + $0xb0] sm:$0xff] }
  0x1d   :  { %1229 = vmatmul.msk.bf16.gmra.mxu0 %vm288_vm2, %v1293_v12  ;;  %1240 = vmatmul.msk.bf16.gmra.mxu1 %vm288_vm2, %v1304_v13 }
  0x1e   :  { %1242 = vmatmul.msk.bf16.gmra.mxu2 %vm288_vm2, %v1306_v14  ;;  %1252 = vmatmul.msk.bf16.gmra.mxu3 %vm288_vm2, %v1316_v15 }
  0x2d   :  { %1230 = vmatmul.msk.bf16.gmra.mxu0 %vm288_vm2, %v1294_v16  ;;  %v1302_v16 = vld [vmem:[%s1940_s0 + $0x50] sm:$0xff] }
  0x2e   :  { %1243 = vmatmul.msk.bf16.gmra.mxu2 %vm288_vm2, %v1307_v17  ;;  %1253 = vmatmul.msk.bf16.gmra.mxu3 %vm288_vm2, %v1317_v18 }
  0x3d   :  { %1231 = vmatmul.msk.bf16.gmra.mxu0 %vm288_vm2, %v1295_v19 }
  0x3e   :  { %1244 = vmatmul.msk.bf16.gmra.mxu2 %vm288_vm2, %v1308_v20  ;;  %1254 = vmatmul.msk.bf16.gmra.mxu3 %vm288_vm2, %v1318_v21 }
  0x4d   :  { %1232 = vmatmul.msk.bf16.gmra.mxu0 %vm288_vm2, %v1296_v22 }
  0x4e   :  { %1245 = vmatmul.msk.bf16.gmra.mxu2 %vm288_vm2, %v1309_v23  ;;  %1255 = vmatmul.msk.bf16.gmra.mxu3 %vm288_vm2, %v1319_v24 }
  0x5d   :  { %1233 = vmatmul.msk.bf16.gmra.mxu0 %vm288_vm2, %v1297_v25 }
  0x5e   :  { %1246 = vmatmul.msk.bf16.gmra.mxu2 %vm288_vm2, %v1310_v26  ;;  %1256 = vmatmul.msk.bf16.gmra.mxu3 %vm288_vm2, %v1320_v27 }
  0x6d   :  { %1234 = vmatmul.msk.bf16.gmra.mxu0 %vm288_vm2, %v1298_v28 }
  0x6e   :  { %1247 = vmatmul.msk.bf16.gmra.mxu2 %vm288_vm2, %v1311_v29  ;;  %1257 = vmatmul.msk.bf16.gmra.mxu3 %vm288_vm2, %v1321_v30 }
  0x7d   :  { %1235 = vmatmul.msk.bf16.gmra.mxu0 %vm288_vm2, %v1299_v31 }
  0x7e   :  { %1248 = vmatmul.msk.bf16.gmra.mxu2 %vm288_vm2, %v1312_v32  ;;  %1258 = vmatmul.msk.bf16.gmra.mxu3 %vm288_vm2, %v1322_v33 }
  0x8a   :  { %v401_v35 = vpop.f32.mrf.mxu0  ;;  %v1608_v36 = vpop.f32.mrf.mxu1 }
  0x8b   :  { %v402_v40 = vadd.f32 %v1619_v39, %v401_v35 }
  0x8d   :  { %1236 = vmatmul.msk.bf16.gmra.mxu0 %vm288_vm2, %v1300_v34  ;;  %v561_v46 = vmax.f32 %v402_v40, 0.0 }
  0x8e   :  { %1249 = vmatmul.msk.bf16.gmra.mxu2 %vm288_vm2, %v1313_v37  ;;  %1259 = vmatmul.msk.bf16.gmra.mxu3 %vm288_vm2, %v1323_v38 }
  0x91   :  { %v466_v41 = vpop.f32.mrf.mxu2  ;;  %v1625_v42 = vpop.f32.mrf.mxu3 }
  0x92   :  { %v403_v43 = vpop.f32.mrf.mxu0  ;;  %v1627_v44 = vpop.f32.mrf.mxu1  ;;  %v467_v63 = vadd.f32 %v1619_v39, %v466_v41 }
  0x93   :  { %v404_v45 = vadd.f32 %v1619_v39, %v403_v43 }
  0x94   :  { %v587_v8 = vmax.f32 %v467_v63, 0.0 }
  0x95   :  { %v562_v47 = vmax.f32 %v404_v45, 0.0 }
  0x97   :  { %v625_v48 = vadd.f32 %v562_v47, %v561_v46 }
  0x99   :  { %v468_v49 = vpop.f32.mrf.mxu2  ;;  %v1630_v50 = vpop.f32.mrf.mxu3 }
  0x9a   :  { %v406_v52 = vpop.f32.mrf.mxu0  ;;  %v461_v53 = vpop.f32.mrf.mxu1  ;;  %v469_v3 = vadd.f32 %v1619_v39, %v468_v49 }
  0x9b   :  { %v407_v55 = vadd.f32 %v1619_v39, %v406_v52  ;;  %v462_v58 = vadd.f32 %v1619_v39, %v461_v53 }
  0x9c   :  { %v588_v11 = vmax.f32 %v469_v3, 0.0 }
  0x9d   :  { %v563_v56 = vmax.f32 %v407_v55, 0.0  ;;  %1237 = vmatmul.msk.bf16.gmra.mxu0 %vm288_vm2, %v1301_v51  ;;  %v585_v0 = vmax.f32 %v462_v58, 0.0 }
  0x9e   :  { %1250 = vmatmul.msk.bf16.gmra.mxu2 %vm288_vm2, %v1314_v54 }
  0x9f   :  { %v626_v57 = vadd.f32 %v625_v48, %v563_v56 }
  0xa1   :  { %v471_v59 = vpop.f32.mrf.mxu2  ;;  %v521_v60 = vpop.f32.mrf.mxu3 }
  0xa2   :  { %v408_v61 = vpop.f32.mrf.mxu0  ;;  %v463_v62 = vpop.f32.mrf.mxu1  ;;  %v472_v4 = vadd.f32 %v1619_v39, %v471_v59  ;;  %v522_v7 = vadd.f32 %v1619_v39, %v521_v60 }
  0xa3   :  { %v409_v1 = vadd.f32 %v1619_v39, %v408_v61  ;;  %v464_v2 = vadd.f32 %v1619_v39, %v463_v62 }
  0xa4   :  { %v589_v12 = vmax.f32 %v472_v4, 0.0  ;;  %v609_v17 = vmax.f32 %v522_v7, 0.0 }
  0xa5   :  { %v564_v5 = vmax.f32 %v409_v1, 0.0  ;;  %v586_v6 = vmax.f32 %v464_v2, 0.0 }
  0xa7   :  { %v627_v9 = vadd.f32 %v626_v57, %v564_v5  ;;  %v664_v10 = vadd.f32 %v586_v6, %v585_v0 }
  0xa9   :  { %v665_v13 = vadd.f32 %v664_v10, %v587_v8  ;;  %v473_v14 = vpop.f32.mrf.mxu2  ;;  %v523_v15 = vpop.f32.mrf.mxu3 }
  0xaa   :  { %v474_v18 = vadd.f32 %v1619_v39, %v473_v14  ;;  %v524_v19 = vadd.f32 %v1619_v39, %v523_v15  ;;  %v411_v20 = vpop.f32.mrf.mxu0 }
  0xab   :  { %v666_v21 = vadd.f32 %v665_v13, %v588_v11  ;;  %v412_v22 = vadd.f32 %v1619_v39, %v411_v20 }
  0xac   :  { %v590_v23 = vmax.f32 %v474_v18, 0.0  ;;  %v610_v24 = vmax.f32 %v524_v19, 0.0 }
  0xad   :  { %v667_v25 = vadd.f32 %v666_v21, %v589_v12  ;;  %v565_v26 = vmax.f32 %v412_v22, 0.0  ;;  %1238 = vmatmul.msk.bf16.gmra.mxu0 %vm288_vm2, %v1302_v16 }
  0xae   :  { %v703_v27 = vadd.f32 %v610_v24, %v609_v17 }
  0xaf   :  { %v668_v28 = vadd.f32 %v667_v25, %v590_v23  ;;  %v628_v29 = vadd.f32 %v627_v9, %v565_v26 }
  0xb1   :  { %v476_v30 = vpop.f32.mrf.mxu2  ;;  %v526_v31 = vpop.f32.mrf.mxu3 }
  0xb2   :  { %v477_v32 = vadd.f32 %v1619_v39, %v476_v30  ;;  %v527_v33 = vadd.f32 %v1619_v39, %v526_v31  ;;  %v413_v34 = vpop.f32.mrf.mxu0 }
  0xb3   :  { %v414_v35 = vadd.f32 %v1619_v39, %v413_v34 }
  0xb4   :  { %v591_v37 = vmax.f32 %v477_v32, 0.0  ;;  %v611_v38 = vmax.f32 %v527_v33, 0.0 }
  0xb5   :  { %v566_v40 = vmax.f32 %v414_v35, 0.0 }
  0xb6   :  { %v669_v41 = vadd.f32 %v668_v28, %v591_v37  ;;  %v704_v43 = vadd.f32 %v703_v27, %v611_v38 }
  0xb7   :  { %v629_v45 = vadd.f32 %v628_v29, %v566_v40 }
  0xb9   :  { %v478_v46 = vpop.f32.mrf.mxu2  ;;  %v528_v47 = vpop.f32.mrf.mxu3 }
  0xba   :  { %v479_v48 = vadd.f32 %v1619_v39, %v478_v46  ;;  %v529_v49 = vadd.f32 %v1619_v39, %v528_v47  ;;  %v416_v51 = vpop.f32.mrf.mxu0 }
  0xbb   :  { %v417_v52 = vadd.f32 %v1619_v39, %v416_v51 }
  0xbc   :  { %v592_v53 = vmax.f32 %v479_v48, 0.0  ;;  %v612_v54 = vmax.f32 %v529_v49, 0.0 }
  0xbd   :  { %v567_v55 = vmax.f32 %v417_v52, 0.0 }
  0xbe   :  { %v1661_v56 = vadd.f32 %v669_v41, %v592_v53  ;;  %v705_v57 = vadd.f32 %v704_v43, %v612_v54 }
  0xbf   :  { %v630_v58 = vadd.f32 %v629_v45, %v567_v55 }
  0xc1   :  { %v481_v59 = vpop.f32.mrf.mxu2  ;;  %v531_v60 = vpop.f32.mrf.mxu3 }
  0xc2   :  { %v532_v61 = vadd.f32 %v1619_v39, %v531_v60  ;;  %v418_v62 = vpop.f32.mrf.mxu0  ;;  %v482_v2 = vadd.f32 %v1619_v39, %v481_v59 }
  0xc3   :  { %v419_v63 = vadd.f32 %v1619_v39, %v418_v62  ;;  %v1414_v62 = vmov 64.0  }
  0xc4   :  { %v613_v0 = vmax.f32 %v532_v61, 0.0  ;;  %v593_v7 = vmax.f32 %v482_v2, 0.0  ;;  %1349 = vrcp.f32 %v1414_v62 }
  0xc5   :  { %v568_v1 = vmax.f32 %v419_v63, 0.0 }
  0xc6   :  { %v706_v3 = vadd.f32 %v705_v57, %v613_v0 }
  0xc7   :  { %v631_v4 = vadd.f32 %v630_v58, %v568_v1 }
  0xc9   :  { %v483_v5 = vpop.f32.mrf.mxu2  ;;  %v533_v6 = vpop.f32.mrf.mxu3  ;;  %v632_v63 = vrot.slane %v631_v4, 4 }
  0xca   :  { %v484_v8 = vadd.f32 %v1619_v39, %v483_v5  ;;  %v534_v9 = vadd.f32 %v1619_v39, %v533_v6  ;;  %v421_v10 = vpop.f32.mrf.mxu0  ;;  %v1350_v5 = vpop.eup %1349 }
  0xcb   :  { %v422_v15 = vadd.f32 %v1619_v39, %v421_v10  ;;  %v633_v6 = vadd.f32 %v632_v63, %v631_v4  ;;  %vm734_vm3 = vweird.f32 %v1350_v5 }
  0xcc   :  { %v594_v11 = vmax.f32 %v484_v8, 0.0  ;;  %v614_v12 = vmax.f32 %v534_v9, 0.0  ;;  %v730_v9 = vmul.f32 64.0, %v1350_v5 }
  0xcd   :  { %v569_v24 = vmax.f32 %v422_v15, 0.0  ;;  %v634_v10 = vrot.slane %v633_v6, 2 }
  0xce   :  { %v677_v13 = vadd.f32 %v594_v11, %v593_v7  ;;  %v707_v14 = vadd.f32 %v706_v3, %v614_v12 }
  0xd1   :  { %v486_v16 = vpop.f32.mrf.mxu2  ;;  %v536_v17 = vpop.f32.mrf.mxu3 }
  0xd2   :  { %v487_v18 = vadd.f32 %v1619_v39, %v486_v16  ;;  %v537_v19 = vadd.f32 %v1619_v39, %v536_v17  ;;  %v423_v20 = vpop.f32.mrf.mxu0  ;;  %v731_v16 = vsub.f32 1.0, %v730_v9  ;;  %v635_v17 = vadd.f32 %v634_v10, %v633_v6 }
  0xd3   :  { %v424_v21 = vadd.f32 %v1619_v39, %v423_v20 }
  0xd4   :  { %v595_v22 = vmax.f32 %v487_v18, 0.0  ;;  %v615_v23 = vmax.f32 %v537_v19, 0.0 }
  0xd5   :  { %v570_v25 = vmax.f32 %v424_v21, 0.0 }
  0xd6   :  { %v678_v26 = vadd.f32 %v677_v13, %v595_v22  ;;  %v1672_v27 = vadd.f32 %v707_v14, %v615_v23  ;;  %v732_v22 = vmul.f32 %v1350_v5, %v731_v16  ;;  %v636_v23 = vrot.slane %v635_v17, 1 }
  0xd7   :  { %v638_v28 = vadd.f32 %v570_v25, %v569_v24 }
  0xd9   :  { %v488_v29 = vpop.f32.mrf.mxu2  ;;  %v1674_v30 = vpop.f32.mrf.mxu3 }
  0xda   :  { %v489_v31 = vadd.f32 %v1619_v39, %v488_v29  ;;  %v426_v32 = vpop.f32.mrf.mxu0  ;;  %v637_v29 = vadd.f32 %v636_v23, %v635_v17 }
  0xdb   :  { %v427_v33 = vadd.f32 %v1619_v39, %v426_v32 }
  0xdc   :  { %v596_v34 = vmax.f32 %v489_v31, 0.0 }
  0xdd   :  { %v571_v35 = vmax.f32 %v427_v33, 0.0 }
  0xde   :  { %v679_v37 = vadd.f32 %v678_v26, %v596_v34 }
  0xdf   :  { %v639_v38 = vadd.f32 %v638_v28, %v571_v35  ;;  %v733_v28 = vadd.f32 %v1350_v5, %v732_v22 }
  0xe1   :  { %v491_v40 = vpop.f32.mrf.mxu2  ;;  %v541_v41 = vpop.f32.mrf.mxu3  ;;  %v1694_v34 = vsel %vm734_vm3, %v1350_v5, %v733_v28 }
  0xe2   :  { %v492_v43 = vadd.f32 %v1619_v39, %v491_v40  ;;  %v428_v45 = vpop.f32.mrf.mxu0  ;;  %v736_v35 = vmul.f32 %v1694_v34, %v637_v29  ;;  %v542_v40 = vadd.f32 %v1619_v39, %v541_v41 }
  0xe3   :  { %v429_v46 = vadd.f32 %v1619_v39, %v428_v45 }
  0xe4   :  { %v597_v47 = vmax.f32 %v492_v43, 0.0 }
  0xe5   :  { %v572_v48 = vmax.f32 %v429_v46, 0.0 }
  0xe6   :  { %v1680_v49 = vadd.f32 %v679_v37, %v597_v47  ;;  %v744_v47 = vpack.c.bf16 %v736_v35, %v736_v35 }
  0xe7   :  { %v640_v51 = vadd.f32 %v639_v38, %v572_v48 }
  0xe9   :  { %v1682_v52 = vpop.f32.mrf.mxu2  ;;  %v543_v53 = vpop.f32.mrf.mxu3 }
  0xea   :  { %v431_v54 = vpop.f32.mrf.mxu0  ;;  %v544_v43 = vadd.f32 %v1619_v39, %v543_v53 }
  0xeb   :  { %v432_v55 = vadd.f32 %v1619_v39, %v431_v54 }
  0xec   :  { %v618_v54 = vmax.f32 %v544_v43, 0.0 }
  0xed   :  { %v573_v57 = vmax.f32 %v432_v55, 0.0 }
  0xef   :  { %v641_v58 = vadd.f32 %v640_v51, %v573_v57  ;;  %v617_v51 = vmax.f32 %v542_v40, 0.0 }
  0xf1   :  { %v1685_v59 = vpop.f32.mrf.mxu2  ;;  %v546_v60 = vpop.f32.mrf.mxu3  ;;  %v716_v53 = vadd.f32 %v618_v54, %v617_v51 }
  0xf2   :  { %v433_v61 = vpop.f32.mrf.mxu0  ;;  %v547_v55 = vadd.f32 %v1619_v39, %v546_v60  ;;  %v1332_v60 = vld [vmem:[%s1943_s3 + $0x30] sm:$0xff] }
  0xf3   :  { %v434_v2 = vadd.f32 %v1619_v39, %v433_v61  ;;  %v780_v61 = vunpack.c.l.b16 %v744_v47  ;;  %v517_v47 = vadd.f32 %v1619_v39, %v1625_v42 }
  0xf5   :  { %v574_v8 = vmax.f32 %v434_v2, 0.0 }
  0xf7   :  { %v642_v14 = vadd.f32 %v641_v58, %v574_v8  ;;  %v1333_v58 = vld [vmem:[%s1943_s3 + $0x38] sm:$0xff] }
  0xf8   :  { %852 = vmatpush.bf16.msrb.mxu1 %v1333_v58 }
  0xf9   :  { %v1687_v0 = vpop.f32.mrf.mxu2  ;;  %v548_v3 = vpop.f32.mrf.mxu3 }
  0xfa   :  { %v436_v1 = vpop.f32.mrf.mxu0  ;;  %v549_v2 = vadd.f32 %v1619_v39, %v548_v3  ;;  %v1331_v3 = vld [vmem:[%s1943_s3 + $0x28] sm:$0xff]  ;;  %v499_v23 = vadd.f32 %v1619_v39, %v1687_v0 }
  0xfb   :  { %v437_v7 = vadd.f32 %v1619_v39, %v436_v1  ;;  %v619_v1 = vmax.f32 %v547_v55, 0.0 }
  0xfc   :  { %853 = vmatpush.bf16.msrb.mxu1 %v1332_v60  ;;  %v620_v10 = vmax.f32 %v549_v2, 0.0  ;;  %v600_v40 = vmax.f32 %v499_v23, 0.0  ;;  %v1328_v2 = vld [vmem:[%s1943_s3 + $0x10] sm:$0xff]  ;;  %v1326_v23 = vld [vmem:[%s1943_s3] sm:$0xff] }
  0xfd   :  { %v575_v11 = vmax.f32 %v437_v7, 0.0  ;;  %v717_v9 = vadd.f32 %v716_v53, %v619_v1 }
  0xff   :  { %v643_v18 = vadd.f32 %v642_v14, %v575_v11 }
 0x100   :  { %854 = vmatpush.bf16.msrb.mxu1 %v1331_v3  ;;  %v1327_v3 = vld [vmem:[%s1943_s3 + $0x8] sm:$0xff] }
 0x101   :  { %v501_v12 = vpop.f32.mrf.mxu2  ;;  %v551_v19 = vpop.f32.mrf.mxu3 }
 0x102   :  { %v438_v13 = vpop.f32.mrf.mxu0  ;;  %v502_v7 = vadd.f32 %v1619_v39, %v501_v12  ;;  %v552_v11 = vadd.f32 %v1619_v39, %v551_v19  ;;  %v497_v12 = vadd.f32 %v1619_v39, %v1685_v59 }
 0x103   :  { %v439_v15 = vadd.f32 %v1619_v39, %v438_v13  ;;  %v494_v13 = vadd.f32 %v1619_v39, %v1682_v52 }
 0x104   :  { %v601_v14 = vmax.f32 %v502_v7, 0.0 }
 0x105   :  { %v576_v20 = vmax.f32 %v439_v15, 0.0  ;;  %v598_v22 = vmax.f32 %v494_v13, 0.0  ;;  %v946_v13 = vld [vmem:[%s1947_s7 + $0x78] sm:$0xff] }
 0x106   :  { %951 = vmatpush.msrb.mxu3 %v946_v13 }
 0x107   :  { %v644_v21 = vadd.f32 %v643_v18, %v576_v20  ;;  %v718_v18 = vadd.f32 %v717_v9, %v620_v10  ;;  %v621_v20 = vmax.f32 %v552_v11, 0.0 }
 0x109   :  { %v645_v4 = vrot.slane %v644_v21, 4  ;;  %v503_v24 = vpop.f32.mrf.mxu2  ;;  %v553_v33 = vpop.f32.mrf.mxu3 }
 0x10a   :  { %v1692_v25 = vpop.f32.mrf.mxu0  ;;  %v504_v8 = vadd.f32 %v1619_v39, %v503_v24  ;;  %v554_v19 = vadd.f32 %v1619_v39, %v553_v33  ;;  %v1330_v24 = vld [vmem:[%s1943_s3 + $0x20] sm:$0xff]  ;;  %v719_v33 = vadd.f32 %v718_v18, %v621_v20 }
 0x10b   :  { %v646_v26 = vadd.f32 %v645_v4, %v644_v21  ;;  %855 = vmatpush.bf16.msrb.mxu1 %v1330_v24 }
 0x10c   :  { %v602_v15 = vmax.f32 %v504_v8, 0.0  ;;  %v622_v35 = vmax.f32 %v554_v19, 0.0 }
 0x10d   :  { %v647_v31 = vrot.slane %v646_v26, 2 }
 0x10f   :  { %v648_v32 = vadd.f32 %v647_v31, %v646_v26  ;;  %v690_v26 = vadd.f32 %v602_v15, %v601_v14  ;;  %v539_v31 = vadd.f32 %v1619_v39, %v1674_v30  ;;  %v607_v14 = vmax.f32 %v517_v47, 0.0 }
 0x111   :  { %v649_v37 = vrot.slane %v648_v32, 1  ;;  %v506_v38 = vpop.f32.mrf.mxu2  ;;  %v556_v41 = vpop.f32.mrf.mxu3  ;;  %v616_v54 = vmax.f32 %v539_v31, 0.0 }
 0x112   :  { %v443_v45 = vpop.f32.mrf.mxu0  ;;  %v507_v16 = vadd.f32 %v1619_v39, %v506_v38  ;;  %v557_v28 = vadd.f32 %v1619_v39, %v556_v41  ;;  %v681_v38 = vadd.f32 %v1680_v49, %v598_v22 }
 0x113   :  { %v650_v46 = vadd.f32 %v649_v37, %v648_v32  ;;  %v599_v32 = vmax.f32 %v497_v12, 0.0  ;;  %v444_v43 = vadd.f32 %v1619_v39, %v443_v45  ;;  %v720_v45 = vadd.f32 %v719_v33, %v622_v35 }
 0x114   :  { %v603_v59 = vmax.f32 %v507_v16, 0.0  ;;  %v709_v8 = vadd.f32 %v1672_v27, %v616_v54  ;;  %v671_v27 = vrot.slane %v1661_v56, 4  ;;  %v459_v35 = vadd.f32 %v1619_v39, %v1627_v44 }
 0x115   :  { %v737_v48 = vmul.f32 %v1694_v34, %v650_v46  ;;  %v1329_v46 = vld [vmem:[%s1943_s3 + $0x18] sm:$0xff]  ;;  %v682_v55 = vadd.f32 %v681_v38, %v599_v32  ;;  %v578_v42 = vmax.f32 %v444_v43, 0.0 }
 0x116   :  { %v691_v30 = vadd.f32 %v690_v26, %v603_v59  ;;  %856 = vmatpush.bf16.msrb.mxu1 %v1329_v46 }
 0x117   :  { %v745_v57 = vpack.c.bf16 %v737_v48, %v737_v48  ;;  %v623_v48 = vmax.f32 %v557_v28, 0.0  ;;  %v683_v53 = vadd.f32 %v682_v55, %v600_v40  ;;  %v457_v28 = vadd.f32 %v1619_v39, %v1608_v36  ;;  %v944_v36 = vld [vmem:[%s1947_s7 + $0x68] sm:$0xff]  ;;  %v942_v55 = vld [vmem:[%s1947_s7 + $0x58] sm:$0xff] }
 0x119   :  { %v781_v62 = vunpack.c.l.b16 %v745_v57  ;;  %v508_v63 = vpop.f32.mrf.mxu2  ;;  %v558_v4 = vpop.f32.mrf.mxu3  ;;  %v442_v57 = vadd.f32 %v1619_v39, %v1692_v25  ;;  %v519_v25 = vadd.f32 %v1619_v39, %v1630_v50  ;;  %v945_v50 = vld [vmem:[%s1947_s7 + $0x70] sm:$0xff]  ;;  %v684_v12 = vrot.slane %v683_v53, 4 }
 0x11a   :  { %v446_v5 = vpop.f32.mrf.mxu0  ;;  %v509_v21 = vadd.f32 %v1619_v39, %v508_v63  ;;  %v559_v0 = vadd.f32 %v1619_v39, %v558_v4  ;;  %857 = vmatpush.bf16.msrb.mxu1 %v1328_v2  ;;  %952 = vmatpush.msrb.mxu3 %v945_v50  ;;  %v672_v4 = vadd.f32 %v671_v27, %v1661_v56  ;;  %v583_v46 = vmax.f32 %v457_v28, 0.0  ;;  %v940_v2 = vld [vmem:[%s1947_s7 + $0x48] sm:$0xff]  ;;  %v938_v50 = vld [vmem:[%s1947_s7 + $0x38] sm:$0xff] }
 0x11b   :  { %v1705_v6 = vsel %vm788_vm4, %v781_v62, %v780_v61  ;;  %v447_v49 = vadd.f32 %v1619_v39, %v446_v5  ;;  %v721_v5 = vadd.f32 %v720_v45, %v623_v48  ;;  %v577_v9 = vmax.f32 %v442_v57, 0.0  ;;  %v943_v48 = vld [vmem:[%s1947_s7 + $0x60] sm:$0xff] }
 0x11c   :  { %v604_v37 = vmax.f32 %v509_v21, 0.0  ;;  %v624_v62 = vmax.f32 %v559_v0, 0.0  ;;  %v608_v20 = vmax.f32 %v519_v25, 0.0  ;;  %v710_v21 = vrot.slane %v709_v8, 4  ;;  %953 = vmatpush.msrb.mxu3 %v944_v36 }
 0x11d   :  { %v579_v10 = vmax.f32 %v447_v49, 0.0  ;;  %v673_v40 = vrot.slane %v672_v4, 2 }
 0x11e   :  { %v692_v61 = vadd.f32 %v691_v30, %v604_v37  ;;  %v722_v15 = vadd.f32 %v721_v5, %v624_v62  ;;  %858 = vmatpush.bf16.msrb.mxu1 %v1327_v3  ;;  %v711_v37 = vadd.f32 %v710_v21, %v709_v8  ;;  %954 = vmatpush.msrb.mxu3 %v943_v48  ;;  %v941_v62 = vld [vmem:[%s1947_s7 + $0x50] sm:$0xff] }
 0x11f   :  { %v674_v57 = vadd.f32 %v673_v40, %v672_v4  ;;  %v876_v4 = vld [vmem:[%s1945_s5 + $0x40] sm:$0xff] }
 0x120   :  { %v723_v24 = vrot.slane %v722_v15, 4  ;;  %v712_v44 = vrot.slane %v711_v37, 2  ;;  %955 = vmatpush.msrb.mxu3 %v942_v55 }
 0x121   :  { %v511_v17 = vpop.f32.mrf.mxu2  ;;  %v675_v25 = vrot.slane %v674_v57, 1 }
 0x122   :  { %v448_v52 = vpop.f32.mrf.mxu0  ;;  %v512_v29 = vadd.f32 %v1619_v39, %v511_v17  ;;  %v651_v17 = vadd.f32 %v578_v42, %v577_v9  ;;  %859 = vmatpush.bf16.msrb.mxu1 %v1326_v23  ;;  %v724_v56 = vadd.f32 %v723_v24, %v722_v15  ;;  %v713_v42 = vadd.f32 %v712_v44, %v711_v37  ;;  %v939_v9 = vld [vmem:[%s1947_s7 + $0x40] sm:$0xff]  ;;  %v878_v15 = vld [vmem:[%s1945_s5 + $0x50] sm:$0xff] }
 0x123   :  { %v449_v1 = vadd.f32 %v1619_v39, %v448_v52  ;;  %956 = vmatpush.msrb.mxu3 %v941_v62 }
 0x124   :  { %v605_v51 = vmax.f32 %v512_v29, 0.0  ;;  %v652_v52 = vadd.f32 %v651_v17, %v579_v10  ;;  %v685_v29 = vadd.f32 %v684_v12, %v683_v53  ;;  %v725_v49 = vrot.slane %v724_v56, 2  ;;  %v881_v53 = vld [vmem:[%s1945_s5 + $0x68] sm:$0xff]  ;;  %v937_v17 = vld [vmem:[%s1947_s7 + $0x30] sm:$0xff] }
 0x125   :  { %v580_v18 = vmax.f32 %v449_v1, 0.0  ;;  %957 = vmatpush.msrb.mxu3 %v940_v2  ;;  %v714_v13 = vrot.slane %v713_v42, 1  ;;  %v1345_v2 = vld [vmem:[%s1944_s4] ss:$0 sm:$0xff] }
 0x126   :  { %v693_v60 = vadd.f32 %v692_v61, %v605_v51  ;;  %v686_v47 = vrot.slane %v685_v29, 2  ;;  %v726_v5 = vadd.f32 %v725_v49, %v724_v56  ;;  %v933_v56 = vld [vmem:[%s1947_s7 + $0x10] sm:$0xff]  ;;  %v871_v49 = vld [vmem:[%s1945_s5 + $0x18] sm:$0xff] }
 0x127   :  { %v653_v31 = vadd.f32 %v652_v52, %v580_v18  ;;  %958 = vmatpush.msrb.mxu3 %v939_v9  ;;  %v936_v52 = vld [vmem:[%s1947_s7 + $0x28] sm:$0xff]  ;;  %v1002_v9 = vld [vmem:[%s1949_s9 + $0x78] sm:$0xff] }
 0x128   :  { %v687_v45 = vadd.f32 %v686_v47, %v685_v29  ;;  %v727_v27 = vrot.slane %v726_v5, 1  ;;  %v875_v29 = vld [vmem:[%s1945_s5 + $0x38] sm:$0xff]  ;;  %1003 = vmatpush.xpose.msra.mxu1 %v1002_v9 }
 0x129   :  { %v513_v58 = vpop.f32.mrf.mxu2  ;;  %959 = vmatpush.msrb.mxu3 %v938_v50  ;;  %v1347_v50 = vld [vmem:[%s1948_s8] ss:$0 sm:$0xff] }
 0x12a   :  { %v514_v41 = vadd.f32 %v1619_v39, %v513_v58  ;;  %v451_v63 = vpop.f32.mrf.mxu0  ;;  %v883_v58 = vld [vmem:[%s1945_s5 + $0x78] sm:$0xff]  ;;  %v728_v23 = vadd.f32 %v727_v27, %v726_v5 }
 0x12b   :  { %v452_v11 = vadd.f32 %v1619_v39, %v451_v63  ;;  %888 = vmatpush.msrb.mxu2 %v883_v58  ;;  %960 = vmatpush.msrb.mxu3 %v937_v17  ;;  %v1346_v17 = vld [vmem:[%s1946_s6] ss:$0 sm:$0xff] }
 0x12c   :  { %v606_v7 = vmax.f32 %v514_v41, 0.0  ;;  %v882_v41 = vld [vmem:[%s1945_s5 + $0x70] sm:$0xff]  ;;  %v743_v37 = vmul.f32 %v1694_v34, %v728_v23  ;;  %v991_v23 = vld [vmem:[%s1949_s9 + $0x20] sm:$0xff] }
 0x12d   :  { %v581_v22 = vmax.f32 %v452_v11, 0.0  ;;  %889 = vmatpush.msrb.mxu2 %v882_v41  ;;  %v879_v11 = vld [vmem:[%s1945_s5 + $0x58] sm:$0xff]  ;;  %961 = vmatpush.msrb.mxu3 %v936_v52  ;;  %v993_v52 = vld [vmem:[%s1949_s9 + $0x30] sm:$0xff] }
 0x12e   :  { %v694_v16 = vadd.f32 %v693_v60, %v606_v7  ;;  %v880_v60 = vld [vmem:[%s1945_s5 + $0x60] sm:$0xff]  ;;  %v688_v7 = vrot.slane %v687_v45, 1  ;;  %v751_v48 = vpack.c.bf16 %v743_v37, %v743_v37 }
 0x12f   :  { %v654_v0 = vadd.f32 %v653_v31, %v581_v22  ;;  %890 = vmatpush.msrb.mxu2 %v881_v53  ;;  %v870_v53 = vld [vmem:[%s1945_s5 + $0x10] sm:$0xff] }
 0x130   :  { %v695_v19 = vadd.f32 %v694_v16, %v607_v14  ;;  %v676_v14 = vadd.f32 %v675_v25, %v674_v57  ;;  %v689_v16 = vadd.f32 %v688_v7, %v687_v45 }
 0x131   :  { %891 = vmatpush.msrb.mxu2 %v880_v60 }
 0x132   :  { %v696_v26 = vadd.f32 %v695_v19, %v608_v20  ;;  %v453_v59 = vpop.f32.mrf.mxu0  ;;  %v877_v20 = vld [vmem:[%s1945_s5 + $0x48] sm:$0xff]  ;;  %v715_v19 = vadd.f32 %v714_v13, %v713_v42  ;;  %v739_v22 = vmul.f32 %v1694_v34, %v676_v14  ;;  %v740_v24 = vmul.f32 %v1694_v34, %v689_v16  ;;  %v999_v13 = vld [vmem:[%s1949_s9 + $0x60] sm:$0xff]  ;;  %v997_v14 = vld [vmem:[%s1949_s9 + $0x50] sm:$0xff] }
 0x133   :  { %v454_v32 = vadd.f32 %v1619_v39, %v453_v59  ;;  %v584_v39 = vmax.f32 %v459_v35, 0.0  ;;  %892 = vmatpush.msrb.mxu2 %v879_v11  ;;  %v935_v59 = vld [vmem:[%s1947_s7 + $0x20] sm:$0xff]  ;;  %v869_v42 = vld [vmem:[%s1945_s5 + $0x8] sm:$0xff] }
 0x134   :  { %v697_v33 = vrot.slane %v696_v26, 4  ;;  %v742_v31 = vmul.f32 %v1694_v34, %v715_v19  ;;  %v747_v35 = vpack.c.bf16 %v739_v22, %v739_v22  ;;  %962 = vmatpush.msrb.mxu3 %v935_v59  ;;  %v1000_v11 = vld [vmem:[%s1949_s9 + $0x68] sm:$0xff]  ;;  %v987_v59 = vld [vmem:[%s1949_s9] sm:$0xff] }
 0x135   :  { %v582_v38 = vmax.f32 %v454_v32, 0.0  ;;  %893 = vmatpush.msrb.mxu2 %v878_v15  ;;  %v992_v22 = vld [vmem:[%s1949_s9 + $0x28] sm:$0xff] }
 0x136   :  { %v698_v43 = vadd.f32 %v697_v33, %v696_v26  ;;  %v934_v33 = vld [vmem:[%s1947_s7 + $0x18] sm:$0xff]  ;;  %v750_v47 = vpack.c.bf16 %v742_v31, %v742_v31  ;;  %v783_v36 = vunpack.c.l.b16 %v747_v35 }
 0x137   :  { %v655_v30 = vadd.f32 %v654_v0, %v582_v38  ;;  %894 = vmatpush.msrb.mxu2 %v877_v20  ;;  %v874_v0 = vld [vmem:[%s1945_s5 + $0x30] sm:$0xff]  ;;  %v748_v38 = vpack.c.bf16 %v740_v24, %v740_v24  ;;  %963 = vmatpush.msrb.mxu3 %v934_v33 }
 0x138   :  { %v699_v51 = vrot.slane %v698_v43, 2  ;;  %v786_v58 = vunpack.c.l.b16 %v750_v47  ;;  %v989_v24 = vld [vmem:[%s1949_s9 + $0x10] sm:$0xff] }
 0x139   :  { %v656_v54 = vadd.f32 %v655_v30, %v583_v46  ;;  %895 = vmatpush.msrb.mxu2 %v876_v4  ;;  %v873_v46 = vld [vmem:[%s1945_s5 + $0x28] sm:$0xff]  ;;  %964 = vmatpush.msrb.mxu3 %v933_v56  ;;  %v990_v4 = vld [vmem:[%s1949_s9 + $0x18] sm:$0xff] }
 0x13a   :  { %v700_v63 = vadd.f32 %v699_v51, %v698_v43  ;;  %v932_v30 = vld [vmem:[%s1947_s7 + $0x8] sm:$0xff]  ;;  %v872_v51 = vld [vmem:[%s1945_s5 + $0x20] sm:$0xff] }
 0x13b   :  { %v657_v61 = vadd.f32 %v656_v54, %v584_v39  ;;  %896 = vmatpush.msrb.mxu2 %v875_v29  ;;  %v784_v39 = vunpack.c.l.b16 %v748_v38  ;;  %v931_v54 = vld [vmem:[%s1947_s7] sm:$0xff]  ;;  %965 = vmatpush.msrb.mxu3 %v932_v30  ;;  %s1063_s7 = sshll.u32 %s1953_s13, 4  ;;  %s1064_s7 = int_to_ptr.hbm [resolvable:$true] %s1063_s7 }
 0x13c   :  { %v701_v10 = vrot.slane %v700_v63, 1 }
 0x13d   :  { %v658_v1 = vrot.slane %v657_v61, 4  ;;  %897 = vmatpush.msrb.mxu2 %v874_v0  ;;  %966 = vmatpush.msrb.mxu3 %v931_v54 }
 0x13e   :  { %v702_v18 = vadd.f32 %v701_v10, %v700_v63  ;;  %v1001_v10 = vld [vmem:[%s1949_s9 + $0x70] sm:$0xff] }
 0x13f   :  { %v659_v8 = vadd.f32 %v658_v1, %v657_v61  ;;  %898 = vmatpush.msrb.mxu2 %v873_v46  ;;  %v787_v61 = vunpack.c.l.b16 %v751_v48  ;;  %v868_v1 = vld [vmem:[%s1945_s5] sm:$0xff]  ;;  %1004 = vmatpush.xpose.msra.mxu1 %v1001_v10 }
 0x140   :  { %v741_v28 = vmul.f32 %v1694_v34, %v702_v18  ;;  %v995_v18 = vld [vmem:[%s1949_s9 + $0x40] sm:$0xff] }
 0x141   :  { %v660_v3 = vrot.slane %v659_v8, 2  ;;  %899 = vmatpush.msrb.mxu2 %v872_v51  ;;  %v1348_v46 = vld [vmem:[%s1950_s10] ss:$0 sm:$0xff]  ;;  %s1415_s10 = smov [#allocation2]  }
 0x142   :  { %v749_v43 = vpack.c.bf16 %v741_v28, %v741_v28  ;;  %s1061_s1 = sshll.u32 %s1415_s10, 4  ;;  %s1062_s1 = int_to_ptr.vmem [resolvable:$true] %s1061_s1 }
 0x143   :  { %v661_v12 = vadd.f32 %v660_v3, %v659_v8  ;;  %900 = vmatpush.msrb.mxu2 %v871_v49  ;;  %1005 = vmatpush.xpose.msra.mxu1 %v1000_v11  ;;  %v998_v3 = vld [vmem:[%s1949_s9 + $0x58] sm:$0xff] }
 0x144   :  { %v785_v55 = vunpack.c.l.b16 %v749_v43 }
 0x145   :  { %v662_v21 = vrot.slane %v661_v12, 1  ;;  %901 = vmatpush.msrb.mxu2 %v870_v53 }
 0x147   :  { %v663_v26 = vadd.f32 %v662_v21, %v661_v12  ;;  %902 = vmatpush.msrb.mxu2 %v869_v42  ;;  %1006 = vmatpush.xpose.msra.mxu1 %v999_v13  ;;  %v996_v12 = vld [vmem:[%s1949_s9 + $0x48] sm:$0xff]  ;;  %v994_v21 = vld [vmem:[%s1949_s9 + $0x38] sm:$0xff] }
 0x149   :  { %v738_v32 = vmul.f32 %v1694_v34, %v663_v26  ;;  %903 = vmatpush.msrb.mxu2 %v868_v1  ;;  %v988_v26 = vld [vmem:[%s1949_s9 + $0x8] sm:$0xff] }
 0x14b   :  { %v746_v40 = vpack.c.bf16 %v738_v32, %v738_v32  ;;  %1007 = vmatpush.xpose.msra.mxu1 %v998_v3 }
 0x14d   :  { %v782_v34 = vunpack.c.l.b16 %v746_v40 }
 0x14f   :  { %v791_v44 = vsel %vm790_vm5, %v782_v34, %v1705_v6  ;;  %1008 = vmatpush.xpose.msra.mxu1 %v997_v14 }
 0x150   :  { %v793_v57 = vsel %vm792_vm6, %v783_v36, %v791_v44 }
 0x151   :  { %v795_v45 = vsel %vm794_vm7, %v784_v39, %v793_v57 }
 0x152   :  { %v797_v6 = vsel %vm796_vm8, %v785_v55, %v795_v45 }
 0x153   :  { %v799_v62 = vsel %vm798_vm9, %v786_v58, %v797_v6  ;;  %1009 = vmatpush.xpose.msra.mxu1 %v996_v12 }
 0x154   :  { %v801_v41 = vsel %vm800_vm10, %v787_v61, %v799_v62 }
 0x155   :  { %v802_v63 = vpack.c.b16 %v801_v41, %v801_v41 }
 0x157   :  { %860 = vmatmul.bf16.vlgmr.msrb.gmra.mxu1 %v802_v63 }
 0x158   :  { %1010 = vmatpush.xpose.msra.mxu1 %v995_v18 }
 0x15c   :  { %1011 = vmatpush.xpose.msra.mxu1 %v994_v21 }
 0x160   :  { %1012 = vmatpush.xpose.msra.mxu1 %v993_v52 }
 0x164   :  { %1013 = vmatpush.xpose.msra.mxu1 %v992_v22 }
 0x168   :  { %1014 = vmatpush.xpose.msra.mxu1 %v991_v23 }
 0x16c   :  { %1015 = vmatpush.xpose.msra.mxu1 %v990_v4 }
 0x170   :  { %1016 = vmatpush.xpose.msra.mxu1 %v989_v24 }
 0x174   :  { %1017 = vmatpush.xpose.msra.mxu1 %v988_v26 }
 0x178   :  { %1018 = vmatpush.xpose.msra.mxu1 %v987_v59 }
 0x1d4   :  { %v861_v25 = vpop.f32.mrf.mxu1 }
 0x1d5   :  { %v862_v5 = vadd.f32 %v1345_v2, %v861_v25 }
 0x1d7   :  { %v865_v60 = vmax.f32 %v862_v5, 0.0 }
 0x1d9   :  { %904 = vmatmul.f32.vlgmr.msrb.gmra.mxu2 %v865_v60  ;;  %967 = vmatmul.f32.vlgmr.msrb.gmra.mxu3 %v865_v60  ;;  %v866_v7 = vpack.c.bf16 %v865_v60, %v865_v60 }
 0x1db   :  { %867 = vst [vmem:[#allocation4] sm:$0xf] %v866_v7 }
 0x1dc   :  { %v863_v8 = vpop.f32.mrf.mxu1  ;;  %1077 = dma.vmem_to_hbm [thread:$0]  %s1073_s28, 64, %s1075_s30, [#allocation5]  }
 0x25c   :  { %v968_v27 = vpop.f32.mrf.mxu3  ;;  %v905_v20 = vpop.f32.mrf.mxu2 }
 0x25d   :  { %v969_v15 = vadd.f32 %v1347_v50, %v968_v27  ;;  %v906_v19 = vadd.f32 %v1346_v17, %v905_v20 }
 0x25f   :  { %v971_v16 = vmul.f32 %v969_v15, %v969_v15 }
 0x261   :  { %972 = vadd.xlane.f32.xlu0 %v971_v16 }
 0x269   :  { %908 = vmax.xlane.f32.xlu0 %v906_v19 }
 0x2d4   :  { %v973_v28 = vpop.xlane.xlu0 %972 }
 0x2d5   :  { %v974_v29 = vmax.f32 %v973_v28, 1e-24 }
 0x2d7   :  { %1351 = vrsqrt.f32 %v974_v29  ;;  %vm981_vm12 = vweird.f32 %v974_v29 }
 0x2dc   :  { %v909_v56 = vpop.xlane.xlu0 %908 }
 0x2dd   :  { %v1352_v31 = vpop.eup %1351  ;;  %v910_v43 = vsub.f32 %v906_v19, %v909_v56 }
 0x2de   :  { %v976_v32 = vmul.f32 %v1352_v31, %v974_v29  ;;  %vm982_vm11 = vweird.f32 %v1352_v31 }
 0x2df   :  { %vm983_vm13 = vmor %vm981_vm12, %vm982_vm11  ;;  %v911_v30 = vmul.f32 1.442695, %v910_v43 }
 0x2e0   :  { %v977_v33 = vmul.f32 %v1352_v31, %v976_v32 }
 0x2e1   :  { %1353 = vpow2.f32 %v911_v30 }
 0x2e2   :  { %v978_v35 = vmul.f32 0.5, %v977_v33 }
 0x2e4   :  { %v979_v37 = vsub.f32 1.5, %v978_v35 }
 0x2e6   :  { %v980_v0 = vmul.f32 %v1352_v31, %v979_v37 }
 0x2e7   :  { %v1354_v48 = vpop.eup %1353 }
 0x2e8   :  { %v984_v38 = vsel %vm983_vm13, %v1352_v31, %v980_v0 }
 0x2e9   :  { %v985_v40 = vmul.f32 %v984_v38, %v969_v15 }
 0x2eb   :  { %1019 = vmatmul.f32.vlgmr.msra.gmra.mxu1 %v985_v40  ;;  %986 = vst [vmem:[#allocation2] sm:$0xff] %v985_v40 }
 0x2ec   :  { %1066 = dma.vmem_to_hbm [thread:$0]  %s1062_s1, 128, %s1064_s7, [#allocation3]  }
 0x368   :  { %v1020_v34 = vpop.f32.mrf.mxu1 }
 0x369   :  { %v1023_v47 = vmul.f32 10.0, %v1020_v34 }
 0x36b   :  { %v1028_v36 = vadd.f32 %v1348_v46, %v1023_v47 }
 0x36d   :  { %1029 = vmax.xlane.f32.xlu1 %v1028_v36 }
 0x375   :  { %913 = vadd.xlane.f32.xlu1 %v1354_v48 }
 0x3e0   :  { %v1030_v51 = vpop.xlane.xlu1 %1029 }
 0x3e1   :  { %v1031_v39 = vsub.f32 %v1028_v36, %v1030_v51 }
 0x3e3   :  { %v1032_v44 = vmul.f32 1.442695, %v1031_v39 }
 0x3e5   :  { %1355 = vpow2.f32 %v1032_v44 }
 0x3e8   :  { %v914_v54 = vpop.xlane.xlu1 %913 }
 0x3e9   :  { %1357 = vrcp.f32 %v914_v54  ;;  %v926_v45 = vand.u32 2147483648, %v914_v54  ;;  %v924_v6 = vand.u32 2147483647, %v914_v54  ;;  %vm920_vm15 = vweird.f32 %v914_v54 }
 0x3eb   :  { %v1356_v55 = vpop.eup %1355  ;;  %v927_v41 = vor.u32 1.1754944e-38, %v926_v45  ;;  %vm925_vm1 = vcmp.eq.f32.partialorder %v924_v6, 8.507059e+37 }
 0x3ec   :  { %1034 = vadd.xlane.f32.xlu2 %v1356_v55 }
 0x3ef   :  { %v1358_v57 = vpop.eup %1357 }
 0x3f0   :  { %v916_v49 = vmul.f32 %v1358_v57, %v914_v54  ;;  %vm921_vm14 = vweird.f32 %v1358_v57 }
 0x3f1   :  { %vm922_vm0 = vmor %vm920_vm15, %vm921_vm14 }
 0x3f2   :  { %v917_v58 = vsub.f32 1.0, %v916_v49 }
 0x3f4   :  { %v918_v61 = vmul.f32 %v1358_v57, %v917_v58 }
 0x3f6   :  { %v919_v62 = vadd.f32 %v1358_v57, %v918_v61 }
 0x3f8   :  { %v923_v63 = vsel %vm922_vm0, %v1358_v57, %v919_v62 }
 0x3f9   :  { %v928_v53 = vsel %vm925_vm1, %v927_v41, %v923_v63 }
 0x3fa   :  { %v929_v42 = vmul.f32 %v1354_v48, %v928_v53 }
 0x3fc   :  { %930 = vst [vmem:[%s1951_s11] sm:$0xff] %v929_v42 }
 0x45f   :  { %v1035_v1 = vpop.xlane.xlu2 %1034 }
 0x460   :  { %1359 = vrcp.f32 %v1035_v1  ;;  %v1047_v60 = vand.u32 2147483648, %v1035_v1  ;;  %v1045_v8 = vand.u32 2147483647, %v1035_v1  ;;  %vm1041_vm3 = vweird.f32 %v1035_v1 }
 0x462   :  { %v1048_v10 = vor.u32 1.1754944e-38, %v1047_v60  ;;  %vm1046_vm5 = vcmp.eq.f32.partialorder %v1045_v8, 8.507059e+37 }
 0x466   :  { %v1360_v2 = vpop.eup %1359 }
 0x467   :  { %v1037_v25 = vmul.f32 %v1360_v2, %v1035_v1  ;;  %vm1042_vm2 = vweird.f32 %v1360_v2 }
 0x468   :  { %vm1043_vm4 = vmor %vm1041_vm3, %vm1042_vm2 }
 0x469   :  { %v1038_v5 = vsub.f32 1.0, %v1037_v25 }
 0x46b   :  { %v1039_v7 = vmul.f32 %v1360_v2, %v1038_v5 }
 0x46d   :  { %v1040_v9 = vadd.f32 %v1360_v2, %v1039_v7 }
 0x46f   :  { %v1044_v11 = vsel %vm1043_vm4, %v1360_v2, %v1040_v9 }
 0x470   :  { %v1049_v13 = vsel %vm1046_vm5, %v1048_v10, %v1044_v11 }
 0x471   :  { %v1050_v3 = vmul.f32 %v1356_v55, %v1049_v13 }
 0x473   :  { %1051 = vst [vmem:[%s1952_s12] sm:$0xff] %v1050_v3 }
 0x474   :  { %1409 = dma.done.wait [#allocation3], 128  }
 0x475   :  { %1410 = vsyncadd [#allocation3], 4294967168 }
 0x476   :  { %1411 = dma.done.wait [#allocation5], 64  }
 0x477   :  { %1412 = vsyncadd [#allocation5], 4294967232 }
 0x478   :  { %1090 = vsyncpa [#allocation3], 1 }
 0x479   :  { %1091 = vsyncpa [#allocation5], 1 }

</bundles_post_ra>
